<compile_context>
chip_gen: v5e
topology: v5e:2x2
jax: 0.10.0
libtpu: 0.0.40
codegen_flags: <defaults>
</compile_context>

<pallas_src>
import functools

import jax
import jax.numpy as jnp
from jax import lax
from jax.experimental import pallas as pl
from jax.experimental.pallas import tpu as pltpu


# ------------------------------- fused kernel -------------------------------- #

def _bottleneck_kernel(x_ref, w1_ref, b1_ref, w2_ref, b2_ref, w3_ref, b3_ref,
                       mk0_ref, mk2_ref, o_ref, cen_ref, lft_ref, rgt_ref,
                       *, W, HW, d, PAD, CHUNK, IMGS):
    # x_ref: (IMGS*HW, Cin) f32 -- IMGS images, NHWC-flattened; also the residual.
    P = w1_ref.shape[1]
    n_chunks = HW // CHUNK

    # Zero the halo rows of the three padded scratch copies.  Re-done every grid step
    # (only ~2*PAD*P*3 elements of stores) because the "parallel" grid axis is sharded
    # across TensorCores, so gating on pl.program_id(0) == 0 would leave the second
    # core's scratch uninitialized.
    zhalo = jnp.zeros((PAD, P), jnp.float32)
    for ref in (cen_ref, lft_ref, rgt_ref):
        ref[pl.ds(0, PAD), :] = zhalo
        ref[pl.ds(PAD + HW, PAD), :] = zhalo

    w1 = w1_ref[...]          # (Cin, P)  bf16, BN1 scale folded
    w3 = w3_ref[...]          # (P, Cout) bf16, BN3 scale folded
    b1 = b1_ref[...]          # (1, P)    f32 BN1 shift
    b2 = b2_ref[...]          # (1, P)    f32 BN2 shift
    b3 = b3_ref[...]          # (1, Cout) f32 BN3 shift

    def per_image(img, carry):
        base = img * HW

        # ---- phase 1: conv1 (1x1) + BN1 + ReLU -> three zero-padded VMEM copies ----
        # center copy: unmasked (kx==1 taps); lft/rgt copies: pre-masked so the kx==0 /
        # kx==2 flat-shifted taps never see W-wraparound values.
        def phase1(c, carry):
            r0 = pl.multiple_of(c * CHUNK, CHUNK)
            row = pl.multiple_of(base + r0, CHUNK)
            xr = x_ref[pl.ds(row, CHUNK), :]
            h1 = jnp.dot(xr.astype(jnp.bfloat16), w1,
                         preferred_element_type=jnp.float32)
            h1 = jnp.maximum(h1 + b1, 0.0)                        # (CHUNK, P) f32
            cen_ref[pl.ds(PAD + r0, CHUNK), :] = h1
            lft_ref[pl.ds(PAD + r0, CHUNK), :] = h1 * mk0_ref[pl.ds(r0, CHUNK), :]
            rgt_ref[pl.ds(PAD + r0, CHUNK), :] = h1 * mk2_ref[pl.ds(r0, CHUNK), :]
            return carry

        lax.fori_loop(0, n_chunks, phase1, 0)

        # ---- phase 2: conv2 (3x3 dilated; 9 shifted GEMMs) + BN2 + ReLU,
        #               conv3 (1x1) + BN3, residual add, ReLU -> output rows ----
        def phase2(c, carry):
            r0 = pl.multiple_of(c * CHUNK, CHUNK)
            row = pl.multiple_of(base + r0, CHUNK)

            def tap(ky, kx):
                # Spatial shift (dy, dx) == flat shift dy*W + dx; halo rows handle row
                # under/overflow, the pre-masked copies handle W wrap-around.
                shift = (ky - 1) * d * W + (kx - 1) * d
                src = (lft_ref, cen_ref, rgt_ref)[kx]
                return src[pl.ds(PAD + r0 + shift, CHUNK), :].astype(jnp.bfloat16)

            acc = jnp.dot(tap(0, 0), w2_ref[0], preferred_element_type=jnp.float32)
            for k in range(1, 9):
                acc = acc + jnp.dot(tap(k // 3, k % 3), w2_ref[k],
                                    preferred_element_type=jnp.float32)
            h2 = jnp.maximum(acc + b2, 0.0)                       # (CHUNK, P) f32

            h3 = jnp.dot(h2.astype(jnp.bfloat16), w3,
                         preferred_element_type=jnp.float32) + b3
            res = x_ref[pl.ds(row, CHUNK), :]                     # residual, read late
            o_ref[pl.ds(row, CHUNK), :] = jnp.maximum(h3 + res, 0.0)   # lane-dense 128
            return carry

        lax.fori_loop(0, n_chunks, phase2, 0)
        return carry

    lax.fori_loop(0, IMGS, per_image, 0)


# ------------------------------ forward wrappers ------------------------------ #

def _fold_bn(gamma, beta, rmean, rvar, eps):
    scale = gamma / jnp.sqrt(rvar + eps)
    shift = beta - rmean * scale
    return scale.astype(jnp.float32), shift.astype(jnp.float32)


def _choose_imgs_per_step(N, HW, Cin, Cout,
                          target_rows=1024, min_steps=4, io_budget=12 * 2 ** 20):
    per_img_io = HW * (Cin + Cout) * 4 * 2      # double-buffered f32 in + out blocks
    imgs = min(max(1, target_rows // HW),
               max(1, io_budget // per_img_io),
               max(1, -(-N // min_steps)),
               N)
    while N % imgs:
        imgs -= 1
    return max(1, imgs)


def bottleneck_forward_nhwc(x_nhwc, p, stride=1, dilation=1, eps=1e-5):
    N, H, W, Cin = x_nhwc.shape
    P = p["w2_oihw"].shape[0]
    Cout = p["w3_oihw"].shape[0]
    assert stride == 1 and Cin == Cout, \
        "downsample=None requires stride=1 and inplanes == planes*4"
    d = int(dilation)
    HW = H * W
    assert HW % 8 == 0, "H*W must be a multiple of 8 (sublane tiling)"
    PAD = -(-(d * W + d) // 8) * 8         # sublane-aligned halo for the flat-shift trick
    CHUNK = next(c for c in (64, 32, 16, 8) if HW % c == 0)
    IMGS = _choose_imgs_per_step(N, HW, Cin, Cout)

    x2d = x_nhwc.reshape(N * HW, Cin).astype(jnp.float32)

    s1, b1 = _fold_bn(p["g1"], p["b1"], p["rm1"], p["rv1"], eps)
    s2, b2 = _fold_bn(p["g2"], p["b2"], p["rm2"], p["rv2"], eps)
    s3, b3 = _fold_bn(p["g3"], p["b3"], p["rm3"], p["rv3"], eps)

    # Conv weights -> GEMM layout, BN scale folded into output columns, cast to bf16.
    w1g = (jnp.transpose(p["w1_oihw"][:, :, 0, 0]).astype(jnp.float32)
           * s1[None, :]).astype(jnp.bfloat16)                                  # (Cin, P)
    w2g = ((jnp.transpose(p["w2_oihw"], (2, 3, 1, 0)).astype(jnp.float32)
            * s2[None, None, None, :]).reshape(9, P, P)).astype(jnp.bfloat16)   # (9, P, P)
    w3g = (jnp.transpose(p["w3_oihw"][:, :, 0, 0]).astype(jnp.float32)
           * s3[None, :]).astype(jnp.bfloat16)                                  # (P, Cout)
    b1 = b1.reshape(1, P)
    b2 = b2.reshape(1, P)
    b3 = b3.reshape(1, Cout)

    # Source-column masks for the pre-masked padded copies (host pre-broadcast to
    # (HW, P) so the kernel has no broadcast ops):
    #  * kx==0 taps legally read source columns [0, W-1-d]; wrapped (invalid) reads hit
    #    source columns >= W-d, so the "left" copy zeroes those columns.
    #  * kx==2 taps legally read source columns [d, W-1]; wrapped reads hit columns < d.
    col = jnp.arange(HW, dtype=jnp.int32) % W
    mk0 = jnp.broadcast_to((col < (W - d)).astype(jnp.float32)[:, None], (HW, P))
    mk2 = jnp.broadcast_to((col >= d).astype(jnp.float32)[:, None], (HW, P))

    kernel = functools.partial(_bottleneck_kernel, W=W, HW=HW, d=d, PAD=PAD,
                               CHUNK=CHUNK, IMGS=IMGS)
    MHW = IMGS * HW
    out2d = pl.pallas_call(
        kernel,
        out_shape=jax.ShapeDtypeStruct((N * HW, Cout), jnp.float32),
        grid_spec=pltpu.PrefetchScalarGridSpec(
            num_scalar_prefetch=0,
            grid=(N // IMGS,),
            in_specs=[
                pl.BlockSpec((MHW, Cin), lambda n: (n, 0)),       # x (also the residual)
                pl.BlockSpec((Cin, P), lambda n: (0, 0)),         # w1 (bf16, BN1 folded)
                pl.BlockSpec((1, P), lambda n: (0, 0)),           # BN1 shift
                pl.BlockSpec((9, P, P), lambda n: (0, 0, 0)),     # w2 taps (bf16, BN2 folded)
                pl.BlockSpec((1, P), lambda n: (0, 0)),           # BN2 shift
                pl.BlockSpec((P, Cout), lambda n: (0, 0)),        # w3 (bf16, BN3 folded)
                pl.BlockSpec((1, Cout), lambda n: (0, 0)),        # BN3 shift
                pl.BlockSpec((HW, P), lambda n: (0, 0)),          # kx==0 source mask
                pl.BlockSpec((HW, P), lambda n: (0, 0)),          # kx==2 source mask
            ],
            out_specs=pl.BlockSpec((MHW, Cout), lambda n: (n, 0)),
            scratch_shapes=[pltpu.VMEM((HW + 2 * PAD, P), jnp.float32)] * 3,
        ),
        compiler_params=pltpu.CompilerParams(
            dimension_semantics=("parallel",),
            vmem_limit_bytes=32 * 1024 * 1024,
        ),
    )(x2d, w1g, b1, w2g, b2, w3g, b3, mk0, mk2)

    return out2d.reshape(N, H, W, Cout)


def bottleneck_forward(x_nchw, p, stride=1, dilation=1, eps=1e-5):
    # NCHW module interface.  In a full network keep activations NHWC end-to-end and
    # call bottleneck_forward_nhwc directly to avoid these two edge transposes.
    x_nhwc = jnp.transpose(x_nchw, (0, 2, 3, 1))
    out_nhwc = bottleneck_forward_nhwc(x_nhwc, p, stride, dilation, eps)
    return jnp.transpose(out_nhwc, (0, 3, 1, 2))


# ------------------------------ pure-JAX reference --------------------------- #

def _ref_forward_nchw(x, p, stride=1, dilation=1, eps=1e-5):
    dn = ("NCHW", "OIHW", "NCHW")
    hp = lax.Precision.HIGHEST

    def bn(y, g, b, rm, rv):
        g, b, rm, rv = (t[None, :, None, None] for t in (g, b, rm, rv))
        return g * (y - rm) / jnp.sqrt(rv + eps) + b

    h = lax.conv_general_dilated(x, p["w1_oihw"], (stride, stride), "VALID",
                                 dimension_numbers=dn, precision=hp)
    h = jax.nn.relu(bn(h, p["g1"], p["b1"], p["rm1"], p["rv1"]))
    h = lax.conv_general_dilated(h, p["w2_oihw"], (1, 1),
                                 [(dilation, dilation), (dilation, dilation)],
                                 rhs_dilation=(dilation, dilation),
                                 dimension_numbers=dn, precision=hp)
    h = jax.nn.relu(bn(h, p["g2"], p["b2"], p["rm2"], p["rv2"]))
    h = lax.conv_general_dilated(h, p["w3_oihw"], (1, 1), "VALID",
                                 dimension_numbers=dn, precision=hp)
    h = bn(h, p["g3"], p["b3"], p["rm3"], p["rv3"])
    return jax.nn.relu(h + x)


# ----------------------------------- main ------------------------------------ #

if __name__ == "__main__":
    key = jax.random.PRNGKey(0)
    ks = jax.random.split(key, 16)

    N, H, W = 2, 16, 16
    planes = 32
    inplanes = planes * 4          # downsample=None => inplanes == planes * expansion

    def bn_params(kg, kb, km, kv, c):
        return (1.0 + 0.1 * jax.random.normal(kg, (c,), jnp.float32),
                0.1 * jax.random.normal(kb, (c,), jnp.float32),
                0.1 * jax.random.normal(km, (c,), jnp.float32),
                jax.random.uniform(kv, (c,), jnp.float32, minval=0.5, maxval=1.5))

    g1, b1, rm1, rv1 = bn_params(ks[3], ks[4], ks[5], ks[6], planes)
    g2, b2, rm2, rv2 = bn_params(ks[7], ks[8], ks[9], ks[10], planes)
    g3, b3, rm3, rv3 = bn_params(ks[11], ks[12], ks[13], ks[14], planes * 4)

    params = {
        "w1_oihw": 0.1 * jax.random.normal(ks[0], (planes, inplanes, 1, 1), jnp.float32),
        "w2_oihw": 0.1 * jax.random.normal(ks[1], (planes, planes, 3, 3), jnp.float32),
        "w3_oihw": 0.1 * jax.random.normal(ks[2], (planes * 4, planes, 1, 1), jnp.float32),
        "g1": g1, "b1": b1, "rm1": rm1, "rv1": rv1,
        "g2": g2, "b2": b2, "rm2": rm2, "rv2": rv2,
        "g3": g3, "b3": b3, "rm3": rm3, "rv3": rv3,
    }

    x = jax.random.normal(ks[15], (N, inplanes, H, W), jnp.float32)

    fwd = jax.jit(functools.partial(bottleneck_forward, stride=1, dilation=1))
    out = jax.block_until_ready(fwd(x, params))

    ref = _ref_forward_nchw(x, params, stride=1, dilation=1)
    assert out.shape == ref.shape == (N, inplanes, H, W)
    max_err = float(jnp.max(jnp.abs(out - ref)))
    # bf16 MXU operands (3 chained GEMMs) dominate the error budget; bias/ReLU/residual
    # stay f32, so a ~3e-2 absolute/relative tolerance is the expected bf16 envelope.
    assert jnp.allclose(out, ref, atol=3e-2, rtol=3e-2), f"max abs err = {max_err}"

    print("KERNEL_OK")
</pallas_src>

<mosaic_0001>
module attributes {stable_mosaic.version = 11 : i64} {
  func.func @_bottleneck_kernel(%arg0: i32, %arg1: memref<256x128xf32, #tpu.memory_space<vmem>>, %arg2: memref<128x32xbf16, #tpu.memory_space<vmem>>, %arg3: memref<1x32xf32, #tpu.memory_space<vmem>>, %arg4: memref<9x32x32xbf16, #tpu.memory_space<vmem>>, %arg5: memref<1x32xf32, #tpu.memory_space<vmem>>, %arg6: memref<32x128xbf16, #tpu.memory_space<vmem>>, %arg7: memref<1x128xf32, #tpu.memory_space<vmem>>, %arg8: memref<256x32xf32, #tpu.memory_space<vmem>>, %arg9: memref<256x32xf32, #tpu.memory_space<vmem>>, %arg10: memref<256x128xf32, #tpu.memory_space<vmem>>, %arg11: memref<304x32xf32, #tpu.memory_space<vmem>>, %arg12: memref<304x32xf32, #tpu.memory_space<vmem>>, %arg13: memref<304x32xf32, #tpu.memory_space<vmem>>) attributes {dimension_semantics = [#tpu.dimension_semantics<parallel>], iteration_bounds = array<i64: 2>, scalar_prefetch = 0 : i64, scratch_operands = 3 : i64, tpu.core_type = #tpu.core_type<tc>, window_params = [{transform_indices = @transform_0, window_bounds = array<i64: 256, 128>}, {pipeline_mode = #tpu.pipeline_mode<synchronous>, transform_indices = @transform_1, window_bounds = array<i64: 128, 32>}, {pipeline_mode = #tpu.pipeline_mode<synchronous>, transform_indices = @transform_2, window_bounds = array<i64: 1, 32>}, {pipeline_mode = #tpu.pipeline_mode<synchronous>, transform_indices = @transform_3, window_bounds = array<i64: 9, 32, 32>}, {pipeline_mode = #tpu.pipeline_mode<synchronous>, transform_indices = @transform_4, window_bounds = array<i64: 1, 32>}, {pipeline_mode = #tpu.pipeline_mode<synchronous>, transform_indices = @transform_5, window_bounds = array<i64: 32, 128>}, {pipeline_mode = #tpu.pipeline_mode<synchronous>, transform_indices = @transform_6, window_bounds = array<i64: 1, 128>}, {pipeline_mode = #tpu.pipeline_mode<synchronous>, transform_indices = @transform_7, window_bounds = array<i64: 256, 32>}, {pipeline_mode = #tpu.pipeline_mode<synchronous>, transform_indices = @transform_8, window_bounds = array<i64: 256, 32>}, {transform_indices = @transform_9, window_bounds = array<i64: 256, 128>}]} {
    %cst = arith.constant 0.000000e+00 : f32
    %0 = vector.broadcast %cst : f32 to vector<24x32xf32>
    %c0 = arith.constant 0 : index
    %c0_0 = arith.constant 0 : index
    %1 = vector.load %arg11[%c0, %c0_0] : memref<304x32xf32, #tpu.memory_space<vmem>>, vector<24x32xf32>
    tpu.vector_store %arg11[%c0, %c0_0], %0 {strides = array<i32>} : memref<304x32xf32, #tpu.memory_space<vmem>>, vector<24x32xf32>,
    %c280 = arith.constant 280 : index
    %c0_1 = arith.constant 0 : index
    %2 = vector.load %arg11[%c280, %c0_1] : memref<304x32xf32, #tpu.memory_space<vmem>>, vector<24x32xf32>
    tpu.vector_store %arg11[%c280, %c0_1], %0 {strides = array<i32>} : memref<304x32xf32, #tpu.memory_space<vmem>>, vector<24x32xf32>,
    %c0_2 = arith.constant 0 : index
    %c0_3 = arith.constant 0 : index
    %3 = vector.load %arg12[%c0_2, %c0_3] : memref<304x32xf32, #tpu.memory_space<vmem>>, vector<24x32xf32>
    tpu.vector_store %arg12[%c0_2, %c0_3], %0 {strides = array<i32>} : memref<304x32xf32, #tpu.memory_space<vmem>>, vector<24x32xf32>,
    %c280_4 = arith.constant 280 : index
    %c0_5 = arith.constant 0 : index
    %4 = vector.load %arg12[%c280_4, %c0_5] : memref<304x32xf32, #tpu.memory_space<vmem>>, vector<24x32xf32>
    tpu.vector_store %arg12[%c280_4, %c0_5], %0 {strides = array<i32>} : memref<304x32xf32, #tpu.memory_space<vmem>>, vector<24x32xf32>,
    %c0_6 = arith.constant 0 : index
    %c0_7 = arith.constant 0 : index
    %5 = vector.load %arg13[%c0_6, %c0_7] : memref<304x32xf32, #tpu.memory_space<vmem>>, vector<24x32xf32>
    tpu.vector_store %arg13[%c0_6, %c0_7], %0 {strides = array<i32>} : memref<304x32xf32, #tpu.memory_space<vmem>>, vector<24x32xf32>,
    %c280_8 = arith.constant 280 : index
    %c0_9 = arith.constant 0 : index
    %6 = vector.load %arg13[%c280_8, %c0_9] : memref<304x32xf32, #tpu.memory_space<vmem>>, vector<24x32xf32>
    tpu.vector_store %arg13[%c280_8, %c0_9], %0 {strides = array<i32>} : memref<304x32xf32, #tpu.memory_space<vmem>>, vector<24x32xf32>,
    %c0_10 = arith.constant 0 : index
    %c0_11 = arith.constant 0 : index
    %7 = vector.load %arg2[%c0_10, %c0_11] : memref<128x32xbf16, #tpu.memory_space<vmem>>, vector<128x32xbf16>
    %c0_12 = arith.constant 0 : index
    %c0_13 = arith.constant 0 : index
    %8 = vector.load %arg6[%c0_12, %c0_13] : memref<32x128xbf16, #tpu.memory_space<vmem>>, vector<32x128xbf16>
    %c0_14 = arith.constant 0 : index
    %c0_15 = arith.constant 0 : index
    %9 = vector.load %arg3[%c0_14, %c0_15] : memref<1x32xf32, #tpu.memory_space<vmem>>, vector<1x32xf32>
    %c0_16 = arith.constant 0 : index
    %c0_17 = arith.constant 0 : index
    %10 = vector.load %arg5[%c0_16, %c0_17] : memref<1x32xf32, #tpu.memory_space<vmem>>, vector<1x32xf32>
    %c0_18 = arith.constant 0 : index
    %c0_19 = arith.constant 0 : index
    %11 = vector.load %arg7[%c0_18, %c0_19] : memref<1x128xf32, #tpu.memory_space<vmem>>, vector<1x128xf32>
    %c0_i32 = arith.constant 0 : i32
    %c256_i32 = arith.constant 256 : i32
    %12 = arith.muli %c0_i32, %c256_i32 : i32
    %c0_i32_20 = arith.constant 0 : i32
    %c4_i32 = arith.constant 4 : i32
    %13 = arith.addi %c0_i32_20, %c4_i32 : i32
    %c1_i32 = arith.constant 1 : i32
    scf.for %arg14 = %c0_i32_20 to %13 step %c1_i32  : i32 {
      %c64_i32 = arith.constant 64 : i32
      %15 = arith.muli %arg14, %c64_i32 : i32
      %16 = tpu.assume_multiple %15, 64 : i32
      %17 = arith.addi %12, %16 : i32
      %18 = tpu.assume_multiple %17, 64 : i32
      %19 = arith.index_cast %18 : i32 to index
      %c0_27 = arith.constant 0 : index
      %20 = vector.load %arg1[%19, %c0_27] : memref<256x128xf32, #tpu.memory_space<vmem>>, vector<64x128xf32>
      %21 = arith.truncf %20 : vector<64x128xf32> to vector<64x128xbf16>
      %cst_28 = arith.constant dense<0.000000e+00> : vector<64x32xf32>
      %22 = tpu.matmul %21, %7, %cst_28 {dimension_numbers = #tpu.dot_dimension_numbers<[1], [0], [0], [1], [0, 0, 1, 1], [], []>} : vector<64x128xbf16>, vector<128x32xbf16>, vector<64x32xf32> -> vector<64x32xf32>
      %23 = vector.broadcast %9 : vector<1x32xf32> to vector<64x32xf32>
      %24 = arith.addf %22, %23 : vector<64x32xf32>
      %cst_29 = arith.constant 0.000000e+00 : f32
      %25 = vector.broadcast %cst_29 : f32 to vector<64x32xf32>
      %26 = arith.maximumf %24, %25 : vector<64x32xf32>
      %c24_i32 = arith.constant 24 : i32
      %27 = arith.addi %c24_i32, %16 : i32
      %28 = arith.index_cast %27 : i32 to index
      %c0_30 = arith.constant 0 : index
      %29 = vector.load %arg11[%28, %c0_30] : memref<304x32xf32, #tpu.memory_space<vmem>>, vector<64x32xf32>
      tpu.vector_store %arg11[%28, %c0_30], %26 {strides = array<i32>} : memref<304x32xf32, #tpu.memory_space<vmem>>, vector<64x32xf32>,
      %30 = arith.index_cast %16 : i32 to index
      %c0_31 = arith.constant 0 : index
      %31 = vector.load %arg8[%30, %c0_31] : memref<256x32xf32, #tpu.memory_space<vmem>>, vector<64x32xf32>
      %32 = arith.mulf %26, %31 : vector<64x32xf32>
      %c24_i32_32 = arith.constant 24 : i32
      %33 = arith.addi %c24_i32_32, %16 : i32
      %34 = arith.index_cast %33 : i32 to index
      %c0_33 = arith.constant 0 : index
      %35 = vector.load %arg12[%34, %c0_33] : memref<304x32xf32, #tpu.memory_space<vmem>>, vector<64x32xf32>
      tpu.vector_store %arg12[%34, %c0_33], %32 {strides = array<i32>} : memref<304x32xf32, #tpu.memory_space<vmem>>, vector<64x32xf32>,
      %36 = arith.index_cast %16 : i32 to index
      %c0_34 = arith.constant 0 : index
      %37 = vector.load %arg9[%36, %c0_34] : memref<256x32xf32, #tpu.memory_space<vmem>>, vector<64x32xf32>
      %38 = arith.mulf %26, %37 : vector<64x32xf32>
      %c24_i32_35 = arith.constant 24 : i32
      %39 = arith.addi %c24_i32_35, %16 : i32
      %40 = arith.index_cast %39 : i32 to index
      %c0_36 = arith.constant 0 : index
      %41 = vector.load %arg13[%40, %c0_36] : memref<304x32xf32, #tpu.memory_space<vmem>>, vector<64x32xf32>
      tpu.vector_store %arg13[%40, %c0_36], %38 {strides = array<i32>} : memref<304x32xf32, #tpu.memory_space<vmem>>, vector<64x32xf32>,
    }
    %c4_i32_21 = arith.constant 4 : i32
    %c0_i32_22 = arith.constant 0 : i32
    %c4_i32_23 = arith.constant 4 : i32
    %14 = arith.addi %c0_i32_22, %c4_i32_23 : i32
    %c1_i32_24 = arith.constant 1 : i32
    scf.for %arg14 = %c0_i32_22 to %14 step %c1_i32_24  : i32 {
      %c64_i32 = arith.constant 64 : i32
      %15 = arith.muli %arg14, %c64_i32 : i32
      %16 = tpu.assume_multiple %15, 64 : i32
      %17 = arith.addi %12, %16 : i32
      %18 = tpu.assume_multiple %17, 64 : i32
      %c24_i32 = arith.constant 24 : i32
      %19 = arith.addi %c24_i32, %16 : i32
      %c-17_i32 = arith.constant -17 : i32
      %20 = arith.addi %19, %c-17_i32 : i32
      %21 = arith.index_cast %20 : i32 to index
      %c0_27 = arith.constant 0 : index
      %22 = vector.load %arg12[%21, %c0_27] : memref<304x32xf32, #tpu.memory_space<vmem>>, vector<64x32xf32>
      %23 = arith.truncf %22 : vector<64x32xf32> to vector<64x32xbf16>
      %c0_28 = arith.constant 0 : index
      %c0_29 = arith.constant 0 : index
      %c0_30 = arith.constant 0 : index
      %24 = vector.load %arg4[%c0_28, %c0_29, %c0_30] : memref<9x32x32xbf16, #tpu.memory_space<vmem>>, vector<1x32x32xbf16>
      %25 = vector.shape_cast %24 : vector<1x32x32xbf16> to vector<32x32xbf16>
      %cst_31 = arith.constant dense<0.000000e+00> : vector<64x32xf32>
      %26 = tpu.matmul %23, %25, %cst_31 {dimension_numbers = #tpu.dot_dimension_numbers<[1], [0], [0], [1], [0, 0, 1, 1], [], []>} : vector<64x32xbf16>, vector<32x32xbf16>, vector<64x32xf32> -> vector<64x32xf32>
      %c24_i32_32 = arith.constant 24 : i32
      %27 = arith.addi %c24_i32_32, %16 : i32
      %c-16_i32 = arith.constant -16 : i32
      %28 = arith.addi %27, %c-16_i32 : i32
      %29 = arith.index_cast %28 : i32 to index
      %c0_33 = arith.constant 0 : index
      %30 = vector.load %arg11[%29, %c0_33] : memref<304x32xf32, #tpu.memory_space<vmem>>, vector<64x32xf32>
      %31 = arith.truncf %30 : vector<64x32xf32> to vector<64x32xbf16>
      %c1 = arith.constant 1 : index
      %c0_34 = arith.constant 0 : index
      %c0_35 = arith.constant 0 : index
      %32 = vector.load %arg4[%c1, %c0_34, %c0_35] : memref<9x32x32xbf16, #tpu.memory_space<vmem>>, vector<1x32x32xbf16>
      %33 = vector.shape_cast %32 : vector<1x32x32xbf16> to vector<32x32xbf16>
      %cst_36 = arith.constant dense<0.000000e+00> : vector<64x32xf32>
      %34 = tpu.matmul %31, %33, %cst_36 {dimension_numbers = #tpu.dot_dimension_numbers<[1], [0], [0], [1], [0, 0, 1, 1], [], []>} : vector<64x32xbf16>, vector<32x32xbf16>, vector<64x32xf32> -> vector<64x32xf32>
      %35 = arith.addf %26, %34 : vector<64x32xf32>
      %c24_i32_37 = arith.constant 24 : i32
      %36 = arith.addi %c24_i32_37, %16 : i32
      %c-15_i32 = arith.constant -15 : i32
      %37 = arith.addi %36, %c-15_i32 : i32
      %38 = arith.index_cast %37 : i32 to index
      %c0_38 = arith.constant 0 : index
      %39 = vector.load %arg13[%38, %c0_38] : memref<304x32xf32, #tpu.memory_space<vmem>>, vector<64x32xf32>
      %40 = arith.truncf %39 : vector<64x32xf32> to vector<64x32xbf16>
      %c2 = arith.constant 2 : index
      %c0_39 = arith.constant 0 : index
      %c0_40 = arith.constant 0 : index
      %41 = vector.load %arg4[%c2, %c0_39, %c0_40] : memref<9x32x32xbf16, #tpu.memory_space<vmem>>, vector<1x32x32xbf16>
      %42 = vector.shape_cast %41 : vector<1x32x32xbf16> to vector<32x32xbf16>
      %cst_41 = arith.constant dense<0.000000e+00> : vector<64x32xf32>
      %43 = tpu.matmul %40, %42, %cst_41 {dimension_numbers = #tpu.dot_dimension_numbers<[1], [0], [0], [1], [0, 0, 1, 1], [], []>} : vector<64x32xbf16>, vector<32x32xbf16>, vector<64x32xf32> -> vector<64x32xf32>
      %44 = arith.addf %35, %43 : vector<64x32xf32>
      %c24_i32_42 = arith.constant 24 : i32
      %45 = arith.addi %c24_i32_42, %16 : i32
      %c-1_i32 = arith.constant -1 : i32
      %46 = arith.addi %45, %c-1_i32 : i32
      %47 = arith.index_cast %46 : i32 to index
      %c0_43 = arith.constant 0 : index
      %48 = vector.load %arg12[%47, %c0_43] : memref<304x32xf32, #tpu.memory_space<vmem>>, vector<64x32xf32>
      %49 = arith.truncf %48 : vector<64x32xf32> to vector<64x32xbf16>
      %c3 = arith.constant 3 : index
      %c0_44 = arith.constant 0 : index
      %c0_45 = arith.constant 0 : index
      %50 = vector.load %arg4[%c3, %c0_44, %c0_45] : memref<9x32x32xbf16, #tpu.memory_space<vmem>>, vector<1x32x32xbf16>
      %51 = vector.shape_cast %50 : vector<1x32x32xbf16> to vector<32x32xbf16>
      %cst_46 = arith.constant dense<0.000000e+00> : vector<64x32xf32>
      %52 = tpu.matmul %49, %51, %cst_46 {dimension_numbers = #tpu.dot_dimension_numbers<[1], [0], [0], [1], [0, 0, 1, 1], [], []>} : vector<64x32xbf16>, vector<32x32xbf16>, vector<64x32xf32> -> vector<64x32xf32>
      %53 = arith.addf %44, %52 : vector<64x32xf32>
      %c24_i32_47 = arith.constant 24 : i32
      %54 = arith.addi %c24_i32_47, %16 : i32
      %c0_i32_48 = arith.constant 0 : i32
      %55 = arith.addi %54, %c0_i32_48 : i32
      %56 = arith.index_cast %55 : i32 to index
      %c0_49 = arith.constant 0 : index
      %57 = vector.load %arg11[%56, %c0_49] : memref<304x32xf32, #tpu.memory_space<vmem>>, vector<64x32xf32>
      %58 = arith.truncf %57 : vector<64x32xf32> to vector<64x32xbf16>
      %c4 = arith.constant 4 : index
      %c0_50 = arith.constant 0 : index
      %c0_51 = arith.constant 0 : index
      %59 = vector.load %arg4[%c4, %c0_50, %c0_51] : memref<9x32x32xbf16, #tpu.memory_space<vmem>>, vector<1x32x32xbf16>
      %60 = vector.shape_cast %59 : vector<1x32x32xbf16> to vector<32x32xbf16>
      %cst_52 = arith.constant dense<0.000000e+00> : vector<64x32xf32>
      %61 = tpu.matmul %58, %60, %cst_52 {dimension_numbers = #tpu.dot_dimension_numbers<[1], [0], [0], [1], [0, 0, 1, 1], [], []>} : vector<64x32xbf16>, vector<32x32xbf16>, vector<64x32xf32> -> vector<64x32xf32>
      %62 = arith.addf %53, %61 : vector<64x32xf32>
      %c24_i32_53 = arith.constant 24 : i32
      %63 = arith.addi %c24_i32_53, %16 : i32
      %c1_i32_54 = arith.constant 1 : i32
      %64 = arith.addi %63, %c1_i32_54 : i32
      %65 = arith.index_cast %64 : i32 to index
      %c0_55 = arith.constant 0 : index
      %66 = vector.load %arg13[%65, %c0_55] : memref<304x32xf32, #tpu.memory_space<vmem>>, vector<64x32xf32>
      %67 = arith.truncf %66 : vector<64x32xf32> to vector<64x32xbf16>
      %c5 = arith.constant 5 : index
      %c0_56 = arith.constant 0 : index
      %c0_57 = arith.constant 0 : index
      %68 = vector.load %arg4[%c5, %c0_56, %c0_57] : memref<9x32x32xbf16, #tpu.memory_space<vmem>>, vector<1x32x32xbf16>
      %69 = vector.shape_cast %68 : vector<1x32x32xbf16> to vector<32x32xbf16>
      %cst_58 = arith.constant dense<0.000000e+00> : vector<64x32xf32>
      %70 = tpu.matmul %67, %69, %cst_58 {dimension_numbers = #tpu.dot_dimension_numbers<[1], [0], [0], [1], [0, 0, 1, 1], [], []>} : vector<64x32xbf16>, vector<32x32xbf16>, vector<64x32xf32> -> vector<64x32xf32>
      %71 = arith.addf %62, %70 : vector<64x32xf32>
      %c24_i32_59 = arith.constant 24 : i32
      %72 = arith.addi %c24_i32_59, %16 : i32
      %c15_i32 = arith.constant 15 : i32
      %73 = arith.addi %72, %c15_i32 : i32
      %74 = arith.index_cast %73 : i32 to index
      %c0_60 = arith.constant 0 : index
      %75 = vector.load %arg12[%74, %c0_60] : memref<304x32xf32, #tpu.memory_space<vmem>>, vector<64x32xf32>
      %76 = arith.truncf %75 : vector<64x32xf32> to vector<64x32xbf16>
      %c6 = arith.constant 6 : index
      %c0_61 = arith.constant 0 : index
      %c0_62 = arith.constant 0 : index
      %77 = vector.load %arg4[%c6, %c0_61, %c0_62] : memref<9x32x32xbf16, #tpu.memory_space<vmem>>, vector<1x32x32xbf16>
      %78 = vector.shape_cast %77 : vector<1x32x32xbf16> to vector<32x32xbf16>
      %cst_63 = arith.constant dense<0.000000e+00> : vector<64x32xf32>
      %79 = tpu.matmul %76, %78, %cst_63 {dimension_numbers = #tpu.dot_dimension_numbers<[1], [0], [0], [1], [0, 0, 1, 1], [], []>} : vector<64x32xbf16>, vector<32x32xbf16>, vector<64x32xf32> -> vector<64x32xf32>
      %80 = arith.addf %71, %79 : vector<64x32xf32>
      %c24_i32_64 = arith.constant 24 : i32
      %81 = arith.addi %c24_i32_64, %16 : i32
      %c16_i32 = arith.constant 16 : i32
      %82 = arith.addi %81, %c16_i32 : i32
      %83 = arith.index_cast %82 : i32 to index
      %c0_65 = arith.constant 0 : index
      %84 = vector.load %arg11[%83, %c0_65] : memref<304x32xf32, #tpu.memory_space<vmem>>, vector<64x32xf32>
      %85 = arith.truncf %84 : vector<64x32xf32> to vector<64x32xbf16>
      %c7 = arith.constant 7 : index
      %c0_66 = arith.constant 0 : index
      %c0_67 = arith.constant 0 : index
      %86 = vector.load %arg4[%c7, %c0_66, %c0_67] : memref<9x32x32xbf16, #tpu.memory_space<vmem>>, vector<1x32x32xbf16>
      %87 = vector.shape_cast %86 : vector<1x32x32xbf16> to vector<32x32xbf16>
      %cst_68 = arith.constant dense<0.000000e+00> : vector<64x32xf32>
      %88 = tpu.matmul %85, %87, %cst_68 {dimension_numbers = #tpu.dot_dimension_numbers<[1], [0], [0], [1], [0, 0, 1, 1], [], []>} : vector<64x32xbf16>, vector<32x32xbf16>, vector<64x32xf32> -> vector<64x32xf32>
      %89 = arith.addf %80, %88 : vector<64x32xf32>
      %c24_i32_69 = arith.constant 24 : i32
      %90 = arith.addi %c24_i32_69, %16 : i32
      %c17_i32 = arith.constant 17 : i32
      %91 = arith.addi %90, %c17_i32 : i32
      %92 = arith.index_cast %91 : i32 to index
      %c0_70 = arith.constant 0 : index
      %93 = vector.load %arg13[%92, %c0_70] : memref<304x32xf32, #tpu.memory_space<vmem>>, vector<64x32xf32>
      %94 = arith.truncf %93 : vector<64x32xf32> to vector<64x32xbf16>
      %c8 = arith.constant 8 : index
      %c0_71 = arith.constant 0 : index
      %c0_72 = arith.constant 0 : index
      %95 = vector.load %arg4[%c8, %c0_71, %c0_72] : memref<9x32x32xbf16, #tpu.memory_space<vmem>>, vector<1x32x32xbf16>
      %96 = vector.shape_cast %95 : vector<1x32x32xbf16> to vector<32x32xbf16>
      %cst_73 = arith.constant dense<0.000000e+00> : vector<64x32xf32>
      %97 = tpu.matmul %94, %96, %cst_73 {dimension_numbers = #tpu.dot_dimension_numbers<[1], [0], [0], [1], [0, 0, 1, 1], [], []>} : vector<64x32xbf16>, vector<32x32xbf16>, vector<64x32xf32> -> vector<64x32xf32>
      %98 = arith.addf %89, %97 : vector<64x32xf32>
      %99 = vector.broadcast %10 : vector<1x32xf32> to vector<64x32xf32>
      %100 = arith.addf %98, %99 : vector<64x32xf32>
      %cst_74 = arith.constant 0.000000e+00 : f32
      %101 = vector.broadcast %cst_74 : f32 to vector<64x32xf32>
      %102 = arith.maximumf %100, %101 : vector<64x32xf32>
      %103 = arith.truncf %102 : vector<64x32xf32> to vector<64x32xbf16>
      %cst_75 = arith.constant dense<0.000000e+00> : vector<64x128xf32>
      %104 = tpu.matmul %103, %8, %cst_75 {dimension_numbers = #tpu.dot_dimension_numbers<[1], [0], [0], [1], [0, 0, 1, 1], [], []>} : vector<64x32xbf16>, vector<32x128xbf16>, vector<64x128xf32> -> vector<64x128xf32>
      %105 = vector.broadcast %11 : vector<1x128xf32> to vector<64x128xf32>
      %106 = arith.addf %104, %105 : vector<64x128xf32>
      %107 = arith.index_cast %18 : i32 to index
      %c0_76 = arith.constant 0 : index
      %108 = vector.load %arg1[%107, %c0_76] : memref<256x128xf32, #tpu.memory_space<vmem>>, vector<64x128xf32>
      %109 = arith.addf %106, %108 : vector<64x128xf32>
      %cst_77 = arith.constant 0.000000e+00 : f32
      %110 = vector.broadcast %cst_77 : f32 to vector<64x128xf32>
      %111 = arith.maximumf %109, %110 : vector<64x128xf32>
      %112 = arith.index_cast %18 : i32 to index
      %c0_78 = arith.constant 0 : index
      %113 = vector.load %arg10[%112, %c0_78] : memref<256x128xf32, #tpu.memory_space<vmem>>, vector<64x128xf32>
      tpu.vector_store %arg10[%112, %c0_78], %111 {strides = array<i32>} : memref<256x128xf32, #tpu.memory_space<vmem>>, vector<64x128xf32>,
    }
    %c4_i32_25 = arith.constant 4 : i32
    %c1_i32_26 = arith.constant 1 : i32
    return
  }
  func.func @transform_0(%arg0: i32) -> (i32, i32) {
    %c0_i32 = arith.constant 0 : i32
    %c0_i32_0 = arith.constant 0 : i32
    return %arg0, %c0_i32 : i32, i32
  }
  func.func @transform_1(%arg0: i32) -> (i32, i32) {
    %c0_i32 = arith.constant 0 : i32
    %c0_i32_0 = arith.constant 0 : i32
    %c0_i32_1 = arith.constant 0 : i32
    return %c0_i32, %c0_i32_0 : i32, i32
  }
  func.func @transform_2(%arg0: i32) -> (i32, i32) {
    %c0_i32 = arith.constant 0 : i32
    %c0_i32_0 = arith.constant 0 : i32
    %c0_i32_1 = arith.constant 0 : i32
    return %c0_i32, %c0_i32_0 : i32, i32
  }
  func.func @transform_3(%arg0: i32) -> (i32, i32, i32) {
    %c0_i32 = arith.constant 0 : i32
    %c0_i32_0 = arith.constant 0 : i32
    %c0_i32_1 = arith.constant 0 : i32
    %c0_i32_2 = arith.constant 0 : i32
    return %c0_i32, %c0_i32_0, %c0_i32_1 : i32, i32, i32
  }
  func.func @transform_4(%arg0: i32) -> (i32, i32) {
    %c0_i32 = arith.constant 0 : i32
    %c0_i32_0 = arith.constant 0 : i32
    %c0_i32_1 = arith.constant 0 : i32
    return %c0_i32, %c0_i32_0 : i32, i32
  }
  func.func @transform_5(%arg0: i32) -> (i32, i32) {
    %c0_i32 = arith.constant 0 : i32
    %c0_i32_0 = arith.constant 0 : i32
    %c0_i32_1 = arith.constant 0 : i32
    return %c0_i32, %c0_i32_0 : i32, i32
  }
  func.func @transform_6(%arg0: i32) -> (i32, i32) {
    %c0_i32 = arith.constant 0 : i32
    %c0_i32_0 = arith.constant 0 : i32
    %c0_i32_1 = arith.constant 0 : i32
    return %c0_i32, %c0_i32_0 : i32, i32
  }
  func.func @transform_7(%arg0: i32) -> (i32, i32) {
    %c0_i32 = arith.constant 0 : i32
    %c0_i32_0 = arith.constant 0 : i32
    %c0_i32_1 = arith.constant 0 : i32
    return %c0_i32, %c0_i32_0 : i32, i32
  }
  func.func @transform_8(%arg0: i32) -> (i32, i32) {
    %c0_i32 = arith.constant 0 : i32
    %c0_i32_0 = arith.constant 0 : i32
    %c0_i32_1 = arith.constant 0 : i32
    return %c0_i32, %c0_i32_0 : i32, i32
  }
  func.func @transform_9(%arg0: i32) -> (i32, i32) {
    %c0_i32 = arith.constant 0 : i32
    %c0_i32_0 = arith.constant 0 : i32
    return %arg0, %c0_i32 : i32, i32
  }
}

</mosaic_0001>

<bundles_post_ra>
// kernel: bottleneck_forward.1
= control target key start
LH: loop header
LB: loop body
LE: loop exit
PB: predicated region body
PF: predicated region fallthrough
CT: control target
= control target key end

     0   :  { %s2632_s0 = inlined_call_operand.vmem [shape: f32[512,128], index: 0, kind: input, shape index: {}]   ;;  %s2633_s1 = inlined_call_operand.vmem [shape: bf16[128,32], index: 1, kind: input, shape index: {}]   ;;  %s2634_s2 = inlined_call_operand.vmem [shape: f32[1,32], index: 2, kind: input, shape index: {}]   ;;  %s2635_s3 = inlined_call_operand.vmem [shape: bf16[9,32,32], index: 3, kind: input, shape index: {}]   ;;  %s2636_s4 = inlined_call_operand.vmem [shape: f32[1,32], index: 4, kind: input, shape index: {}]   ;;  %s2637_s5 = inlined_call_operand.vmem [shape: bf16[32,128], index: 5, kind: input, shape index: {}]   ;;  %s2638_s6 = inlined_call_operand.vmem [shape: f32[1,128], index: 6, kind: input, shape index: {}]   ;;  %s2639_s7 = inlined_call_operand.vmem [shape: f32[256,32], index: 7, kind: input, shape index: {}]   ;;  %s2640_s8 = inlined_call_operand.vmem [shape: f32[256,32], index: 8, kind: input, shape index: {}]   ;;  %s2641_s9 = inlined_call_operand.hbm [shape: f32[512,128], index: 9, kind: output, shape index: {}]  }
   0x1   :  { %2643 = sst [smem:[#allocation8_spill]] %s2632_s0 }
   0x2   :  { %2644 = sst [smem:[#allocation9_spill]] %s2633_s1 }
   0x3   :  { %14 = vsyncpa [#allocation6], 0 }
   0x4   :  { %16 = vsyncpa [#allocation6 + $0x1], 0  ;;  %s2058_s30 = smov 0   ;;  %s2060_s10 = smov 0  }
   0x5   :  { %s2062_s11 = smov 0   ;;  %s2064_s12 = smov 0  }
   0x6 LB: > { %s2079_s13 = sadd.s32 4294967295, %s1995_s12   ;;  %s1504_s14 = sadd.s32 4294967294, %s1995_s12   ;;  %s1995_s12 = sphi %s2064_s12, %s2655_s12   ;;  %s1991_s11 = sphi %s2062_s11, %s2654_s11   ;;  %s1987_s10 = sphi %s2060_s10, %s2653_s10   ;;  %s1983_s30 = sphi %s2058_s30, %s2652_s30  }
   0x7   : > { %s2083_s15 = sadd.s32 1, %s1995_s12   ;;  %s223_s16 = sadd.s32 1, %s1991_s11 }
   0x8   : > { %s220_s17 = ssub.s32 %s1995_s12, %s2083_s15  ;;  %p233_p0 = scmp.ne.s32.totalorder %s1991_s11, %s1987_s10 }
   0x9   : > { %p221_p1 = scmp.eq.s32.totalorder %s220_s17, 0  ;;  %p234_p2 = scmp.eq.s32.totalorder %s2079_s13, 1 }
   0xa   : > { %p239_p3 = scmp.ne.s32.totalorder %s1987_s10, %s1983_s30  ;;  %p240_p4 = scmp.eq.s32.totalorder %s1504_s14, 1 }
   0xb   : > { %s2094_s18 = scalar_select %p221_p1, %s1991_s11, %s223_s16  }
   0xc   : > { %p2096_p5 = por %p234_p2, %p233_p0  ;;  %p2100_p6 = por %p240_p4, %p239_p3 }
   0xd   : > { %p1507_p7 = scmp.ge.s32.totalorder %s1995_s12, 1  ;;  %p291_p8 = scmp.lt.s32.totalorder %s1995_s12, 3 }
   0xf   : > { %p292_p9 = pnand %p1507_p7, %p291_p8 }
  0x10   : > { %s2642_s21 = sand.u32 (!%p292_p9), 1, %s1987_s10   ;;  %s1509_s22 = sshll.u32 (!%p292_p9), %s2079_s13, 5 }
  0x11   : > { %295 = sbr.rel (%p292_p9) target bundleno = 683 (0x2ab), region = 56  ;;  %s2647_s1 = sld [smem:[#allocation9_spill]] (!%p292_p9) }
  0x12   : > { %s2115_s25 = sshll.u32 (!%p292_p9), %s2642_s21, 8  ;;  %p328_p10 = scmp.lt.s32.totalorder (!%p292_p9), %s1509_s22, 63 }
  0x13   : > { %s2648_s0 = sld [smem:[#allocation8_spill]] (!%p292_p9)  ;;  %s2251_s26 = smov (!%p292_p9), 0  }
  0x16   : > { %vm335_vm0 = vcmask 261120   ;;  %v2005_v1 = vmov 0.0   ;;  %s2657_s22 = smov (!%p328_p10, %s1509_s22), 63  ;;  %v2209_v17 = vld [vmem:[%s2637_s5] sm:$0xf] }
  0x17   : > { %v2111_v0 = vld [vmem:[%s2647_s1] sm:$0xf]  ;;  %336 = vst.msk [vmem:[#allocation2] sm:$0xff] %vm335_vm0, %v2005_v1  ;;  %v2121_v2 = vld [vmem:[%s2647_s1] sm:$0xf0]  ;;  %s1510_s16 = sshll.u32 %s2657_s22, 3 }
  0x18   : > { %337 = vst.msk [vmem:[#allocation2 + $0x8] sm:$0xff] %vm335_vm0, %v2005_v1  ;;  %v2127_v3 = vld [vmem:[%s2647_s1 + $0x8] sm:$0xf]  ;;  %v2132_v4 = vld [vmem:[%s2647_s1 + $0x8] sm:$0xf0] }
  0x19   : > { %338 = vst.msk [vmem:[#allocation2 + $0x10] sm:$0xff] %vm335_vm0, %v2005_v1  ;;  %v2138_v5 = vld [vmem:[%s2647_s1 + $0x10] sm:$0xf]  ;;  %v2143_v6 = vld [vmem:[%s2647_s1 + $0x10] sm:$0xf0]  ;;  %s2170_s21 = scalar_lea.vmem %s2648_s0, %s1510_s16 }
  0x1a   : > { %339 = vst.msk [vmem:[#allocation2 + $0x118] sm:$0xff] %vm335_vm0, %v2005_v1  ;;  %v2149_v7 = vld [vmem:[%s2647_s1 + $0x18] sm:$0xf]  ;;  %v2154_v8 = vld [vmem:[%s2647_s1 + $0x18] sm:$0xf0] }
  0x1b   : > { %340 = vst.msk [vmem:[#allocation2 + $0x120] sm:$0xff] %vm335_vm0, %v2005_v1  ;;  %v2160_v9 = vld [vmem:[%s2647_s1 + $0x20] sm:$0xf]  ;;  %v2165_v10 = vld [vmem:[%s2647_s1 + $0x20] sm:$0xf0] }
  0x1c   : > { %341 = vst.msk [vmem:[#allocation2 + $0x128] sm:$0xff] %vm335_vm0, %v2005_v1  ;;  %v2176_v11 = vld [vmem:[%s2647_s1 + $0x28] sm:$0xf]  ;;  %v2181_v12 = vld [vmem:[%s2647_s1 + $0x28] sm:$0xf0] }
  0x1d   : > { %342 = vst.msk [vmem:[#allocation3] sm:$0xff] %vm335_vm0, %v2005_v1  ;;  %v2187_v13 = vld [vmem:[%s2647_s1 + $0x30] sm:$0xf]  ;;  %v2192_v14 = vld [vmem:[%s2647_s1 + $0x30] sm:$0xf0] }
  0x1e   : > { %343 = vst.msk [vmem:[#allocation3 + $0x8] sm:$0xff] %vm335_vm0, %v2005_v1  ;;  %v2198_v15 = vld [vmem:[%s2647_s1 + $0x38] sm:$0xf]  ;;  %v2203_v16 = vld [vmem:[%s2647_s1 + $0x38] sm:$0xf0] }
  0x1f   : > { %344 = vst.msk [vmem:[#allocation3 + $0x10] sm:$0xff] %vm335_vm0, %v2005_v1  ;;  %v2214_v18 = vld [vmem:[%s2637_s5] sm:$0xf0]  ;;  %v2220_v19 = vld [vmem:[%s2637_s5 + $0x8] sm:$0xf] }
  0x20   : > { %345 = vst.msk [vmem:[#allocation3 + $0x118] sm:$0xff] %vm335_vm0, %v2005_v1  ;;  %v2225_v20 = vld [vmem:[%s2637_s5 + $0x8] sm:$0xf0]  ;;  %v2231_v21 = vld [vmem:[%s2634_s2] sm:$0x1] }
  0x21   : > { %346 = vst.msk [vmem:[#allocation3 + $0x120] sm:$0xff] %vm335_vm0, %v2005_v1  ;;  %v2236_v22 = vld [vmem:[%s2636_s4] sm:$0x1] }
  0x22   : > { %347 = vst.msk [vmem:[#allocation3 + $0x128] sm:$0xff] %vm335_vm0, %v2005_v1  ;;  %v2242_v23 = vld [vmem:[%s2638_s6] sm:$0x1] }
  0x23   : > { %348 = vst.msk [vmem:[#allocation4] sm:$0xff] %vm335_vm0, %v2005_v1 }
  0x24   : > { %349 = vst.msk [vmem:[#allocation4 + $0x8] sm:$0xff] %vm335_vm0, %v2005_v1 }
  0x25   : > { %350 = vst.msk [vmem:[#allocation4 + $0x10] sm:$0xff] %vm335_vm0, %v2005_v1 }
  0x26   : > { %351 = vst.msk [vmem:[#allocation4 + $0x118] sm:$0xff] %vm335_vm0, %v2005_v1 }
  0x27   : > { %352 = vst.msk [vmem:[#allocation4 + $0x120] sm:$0xff] %vm335_vm0, %v2005_v1 }
  0x28   : > { %353 = vst.msk [vmem:[#allocation4 + $0x128] sm:$0xff] %vm335_vm0, %v2005_v1 }
  0x29 LB: >> { %v1543_v24 = vor.u32 %v2203_v16, %v2198_v15  ;;  %v1539_v25 = vor.u32 %v2192_v14, %v2187_v13  ;;  %v1535_v26 = vor.u32 %v2181_v12, %v2176_v11  ;;  %v1531_v27 = vor.u32 %v2165_v10, %v2160_v9  ;;  %s2269_s27 = sshll.u32 %s1999_s26, 6  ;;  %s382_s26 = sadd.s32 1, %s1999_s26   ;;  %s1999_s26 = sphi %s2251_s26, %s382_s26  }
  0x2a   : >> { %v1527_v28 = vor.u32 %v2154_v8, %v2149_v7  ;;  %v1523_v29 = vor.u32 %v2143_v6, %v2138_v5  ;;  %v1519_v30 = vor.u32 %v2132_v4, %v2127_v3  ;;  %s384_s28 = scalar_lea.vmem %s2170_s21, %s2269_s27  ;;  %v1515_v33 = vor.u32 %v2121_v2, %v2111_v0  ;;  %s2282_s14 = scalar_lea.vmem %s2639_s7, %s2269_s27 }
  0x2b   : >> { %448 = vmatpush.bf16.msra.mxu0 %v1543_v24  ;;  %1839 = vmatpush.bf16.msra.mxu1 %v1543_v24  ;;  %v385_v31 = vld [vmem:[%s384_s28] sm:$0xff]  ;;  %v386_v32 = vld [vmem:[%s384_s28 + $0x8] sm:$0xff]  ;;  %v387_v34 = vld [vmem:[%s384_s28 + $0x10] sm:$0xff]  ;;  %v398_v44 = vperm.slane %v2231_v21, 0  ;;  %s2288_s24 = scalar_lea.vmem %s2640_s8, %s2269_s27  ;;  %s2302_s22 = scalar_lea.vmem [#allocation3], %s2269_s27 }
  0x2c   : >> { %1840 = vmatpush.bf16.msra.mxu2 %v1543_v24  ;;  %1841 = vmatpush.bf16.msra.mxu3 %v1543_v24  ;;  %v388_v35 = vld [vmem:[%s384_s28 + $0x18] sm:$0xff]  ;;  %v389_v36 = vld [vmem:[%s384_s28 + $0x20] sm:$0xff]  ;;  %v390_v37 = vld [vmem:[%s384_s28 + $0x28] sm:$0xff]  ;;  %v393_v40 = vpack.c.bf16 %v386_v32, %v385_v31  ;;  %s2307_s29 = scalar_lea.vmem [#allocation4], %s2269_s27  ;;  %p379_p11 = scmp.ge.s32.totalorder %s382_s26, 4  }
  0x2d   : >> { %v391_v38 = vld [vmem:[%s384_s28 + $0x30] sm:$0xff]  ;;  %v392_v39 = vld [vmem:[%s384_s28 + $0x38] sm:$0xff]  ;;  %v394_v41 = vpack.c.bf16 %v388_v35, %v387_v34  ;;  %v395_v42 = vpack.c.bf16 %v390_v37, %v389_v36  ;;  %v496_v49 = vld [vmem:[%s2282_s14] sm:$0xff]  ;;  %s2295_s28 = scalar_lea.vmem [#allocation2], %s2269_s27  ;;  %s2366_s27 = smov (%p379_p11), 0  }
  0x2e   : >> { %v396_v43 = vpack.c.bf16 %v392_v39, %v391_v38  ;;  %v522_v50 = vld [vmem:[%s2288_s24] sm:$0xff]  ;;  %v498_v51 = vld [vmem:[%s2282_s14 + $0x10] sm:$0xff]  ;;  %v497_v36 = vld [vmem:[%s2282_s14 + $0x8] sm:$0xff] }
  0x2f   : >> { %449 = vmatpush.bf16.msra.mxu0 %v1539_v25  ;;  %1842 = vmatpush.bf16.msra.mxu1 %v1539_v25  ;;  %v524_v54 = vld [vmem:[%s2288_s24 + $0x10] sm:$0xff]  ;;  %v500_v24 = vld [vmem:[%s2282_s14 + $0x20] sm:$0xff]  ;;  %v523_v38 = vld [vmem:[%s2288_s24 + $0x8] sm:$0xff] }
  0x30   : >> { %1843 = vmatpush.bf16.msra.mxu2 %v1539_v25  ;;  %1844 = vmatpush.bf16.msra.mxu3 %v1539_v25  ;;  %v526_v25 = vld [vmem:[%s2288_s24 + $0x20] sm:$0xff] }
  0x33   : >> { %450 = vmatpush.bf16.msra.mxu0 %v1535_v26  ;;  %1845 = vmatpush.bf16.msra.mxu1 %v1535_v26 }
  0x34   : >> { %1846 = vmatpush.bf16.msra.mxu2 %v1535_v26  ;;  %1847 = vmatpush.bf16.msra.mxu3 %v1535_v26  ;;  %v502_v26 = vld [vmem:[%s2282_s14 + $0x30] sm:$0xff] }
  0x37   : >> { %451 = vmatpush.bf16.msra.mxu0 %v1531_v27  ;;  %1848 = vmatpush.bf16.msra.mxu1 %v1531_v27 }
  0x38   : >> { %1849 = vmatpush.bf16.msra.mxu2 %v1531_v27  ;;  %1850 = vmatpush.bf16.msra.mxu3 %v1531_v27 }
  0x3b   : >> { %452 = vmatpush.bf16.msra.mxu0 %v1527_v28  ;;  %1851 = vmatpush.bf16.msra.mxu1 %v1527_v28 }
  0x3c   : >> { %1852 = vmatpush.bf16.msra.mxu2 %v1527_v28  ;;  %1853 = vmatpush.bf16.msra.mxu3 %v1527_v28 }
  0x3f   : >> { %453 = vmatpush.bf16.msra.mxu0 %v1523_v29  ;;  %1854 = vmatpush.bf16.msra.mxu1 %v1523_v29 }
  0x40   : >> { %1855 = vmatpush.bf16.msra.mxu2 %v1523_v29  ;;  %1856 = vmatpush.bf16.msra.mxu3 %v1523_v29 }
  0x43   : >> { %454 = vmatpush.bf16.msra.mxu0 %v1519_v30  ;;  %1857 = vmatpush.bf16.msra.mxu1 %v1519_v30 }
  0x44   : >> { %1858 = vmatpush.bf16.msra.mxu2 %v1519_v30  ;;  %1859 = vmatpush.bf16.msra.mxu3 %v1519_v30  ;;  %v528_v30 = vld [vmem:[%s2288_s24 + $0x30] sm:$0xff] }
  0x47   : >> { %455 = vmatpush.bf16.msra.mxu0 %v1515_v33  ;;  %1860 = vmatpush.bf16.msra.mxu1 %v1515_v33 }
  0x48   : >> { %1861 = vmatpush.bf16.msra.mxu2 %v1515_v33  ;;  %1862 = vmatpush.bf16.msra.mxu3 %v1515_v33 }
  0x4a   : >> { %456 = vmatmul.bf16.vlgmr.msra.gmra.mxu0 %v393_v40  ;;  %461 = vmatmul.bf16.vlgmr.msra.gmra.mxu1 %v394_v41  ;;  %v499_v41 = vld [vmem:[%s2282_s14 + $0x18] sm:$0xff] }
  0x4b   : >> { %466 = vmatmul.bf16.vlgmr.msra.gmra.mxu2 %v395_v42  ;;  %471 = vmatmul.bf16.vlgmr.msra.gmra.mxu3 %v396_v43 }
  0xc7   : >> { %v457_v45 = vpop.f32.mrf.mxu0  ;;  %v462_v46 = vpop.f32.mrf.mxu1 }
  0xc8   : >> { %v458_v47 = vadd.f32 %v457_v45, %v398_v44  ;;  %v463_v48 = vadd.f32 %v462_v46, %v398_v44  ;;  %v525_v46 = vld [vmem:[%s2288_s24 + $0x18] sm:$0xff] }
  0xca   : >> { %v477_v52 = vmax.f32 %v458_v47, 0.0  ;;  %v479_v53 = vmax.f32 %v463_v48, 0.0 }
  0xcc   : >> { %1545 = vst.msk [vmem:[%s2295_s28 + $0x18] sm:$0xff] %vm335_vm0, %v477_v52  ;;  %v504_v55 = vmul.f32 %v496_v49, %v477_v52  ;;  %v530_v56 = vmul.f32 %v522_v50, %v477_v52  ;;  %v506_v57 = vmul.f32 %v498_v51, %v479_v53  ;;  %v532_v58 = vmul.f32 %v524_v54, %v479_v53  ;;  %v501_v51 = vld [vmem:[%s2282_s14 + $0x28] sm:$0xff] }
  0xcd   : >> { %1547 = vst.msk [vmem:[%s2295_s28 + $0x28] sm:$0xff] %vm335_vm0, %v479_v53  ;;  %v527_v53 = vld [vmem:[%s2288_s24 + $0x28] sm:$0xff] }
  0xce   : >> { %1554 = vst.msk [vmem:[%s2302_s22 + $0x18] sm:$0xff] %vm335_vm0, %v504_v55  ;;  %v467_v59 = vpop.f32.mrf.mxu2  ;;  %v472_v60 = vpop.f32.mrf.mxu3  ;;  %v503_v55 = vld [vmem:[%s2282_s14 + $0x38] sm:$0xff] }
  0xcf   : >> { %1563 = vst.msk [vmem:[%s2307_s29 + $0x18] sm:$0xff] %vm335_vm0, %v530_v56  ;;  %v468_v61 = vadd.f32 %v467_v59, %v398_v44  ;;  %v473_v62 = vadd.f32 %v472_v60, %v398_v44  ;;  %v459_v63 = vpop.f32.mrf.mxu0  ;;  %v464_v1 = vpop.f32.mrf.mxu1 }
  0xd0   : >> { %1556 = vst.msk [vmem:[%s2302_s22 + $0x28] sm:$0xff] %vm335_vm0, %v506_v57  ;;  %v460_v27 = vadd.f32 %v459_v63, %v398_v44  ;;  %v465_v31 = vadd.f32 %v464_v1, %v398_v44  ;;  %v529_v57 = vld [vmem:[%s2288_s24 + $0x38] sm:$0xff] }
  0xd1   : >> { %1565 = vst.msk [vmem:[%s2307_s29 + $0x28] sm:$0xff] %vm335_vm0, %v532_v58  ;;  %v481_v28 = vmax.f32 %v468_v61, 0.0  ;;  %v483_v29 = vmax.f32 %v473_v62, 0.0 }
  0xd2   : >> { %v478_v32 = vmax.f32 %v460_v27, 0.0  ;;  %v480_v39 = vmax.f32 %v465_v31, 0.0 }
  0xd3   : >> { %1549 = vst.msk [vmem:[%s2295_s28 + $0x38] sm:$0xff] %vm335_vm0, %v481_v28  ;;  %v508_v33 = vmul.f32 %v500_v24, %v481_v28  ;;  %v534_v34 = vmul.f32 %v526_v25, %v481_v28  ;;  %v510_v35 = vmul.f32 %v502_v26, %v483_v29  ;;  %v536_v37 = vmul.f32 %v528_v30, %v483_v29 }
  0xd4   : >> { %1551 = vst.msk [vmem:[%s2295_s28 + $0x48] sm:$0xff] %vm335_vm0, %v483_v29  ;;  %v505_v40 = vmul.f32 %v497_v36, %v478_v32  ;;  %v531_v45 = vmul.f32 %v523_v38, %v478_v32  ;;  %v507_v49 = vmul.f32 %v499_v41, %v480_v39  ;;  %v533_v52 = vmul.f32 %v525_v46, %v480_v39 }
  0xd5   : >> { %1558 = vst.msk [vmem:[%s2302_s22 + $0x38] sm:$0xff] %vm335_vm0, %v508_v33 }
  0xd6   : >> { %1567 = vst.msk [vmem:[%s2307_s29 + $0x38] sm:$0xff] %vm335_vm0, %v534_v34  ;;  %v469_v42 = vpop.f32.mrf.mxu2  ;;  %v474_v43 = vpop.f32.mrf.mxu3 }
  0xd7   : >> { %1560 = vst.msk [vmem:[%s2302_s22 + $0x48] sm:$0xff] %vm335_vm0, %v510_v35  ;;  %v470_v47 = vadd.f32 %v469_v42, %v398_v44  ;;  %v475_v48 = vadd.f32 %v474_v43, %v398_v44 }
  0xd8   : >> { %1569 = vst.msk [vmem:[%s2307_s29 + $0x48] sm:$0xff] %vm335_vm0, %v536_v37 }
  0xd9   : >> { %1546 = vst.msk [vmem:[%s2295_s28 + $0x20] sm:$0xff] %vm335_vm0, %v478_v32  ;;  %v482_v50 = vmax.f32 %v470_v47, 0.0  ;;  %v484_v44 = vmax.f32 %v475_v48, 0.0 }
  0xda   : >> { %1555 = vst.msk [vmem:[%s2302_s22 + $0x20] sm:$0xff] %vm335_vm0, %v505_v40 }
  0xdb   : >> { %1564 = vst.msk [vmem:[%s2307_s29 + $0x20] sm:$0xff] %vm335_vm0, %v531_v45  ;;  %v509_v54 = vmul.f32 %v501_v51, %v482_v50  ;;  %v535_v56 = vmul.f32 %v527_v53, %v482_v50  ;;  %v511_v58 = vmul.f32 %v503_v55, %v484_v44  ;;  %v537_v59 = vmul.f32 %v529_v57, %v484_v44 }
  0xdc   : >> { %1548 = vst.msk [vmem:[%s2295_s28 + $0x30] sm:$0xff] %vm335_vm0, %v480_v39 }
  0xdd   : >> { %1557 = vst.msk [vmem:[%s2302_s22 + $0x30] sm:$0xff] %vm335_vm0, %v507_v49 }
  0xde   : >> { %1566 = vst.msk [vmem:[%s2307_s29 + $0x30] sm:$0xff] %vm335_vm0, %v533_v52 }
  0xdf   : >> { %1550 = vst.msk [vmem:[%s2295_s28 + $0x40] sm:$0xff] %vm335_vm0, %v482_v50 }
  0xe0   : >> { %1559 = vst.msk [vmem:[%s2302_s22 + $0x40] sm:$0xff] %vm335_vm0, %v509_v54  ;;  %381 = sbr.rel (!%p379_p11) target bundleno = 41 (0x29), region = 130 }
  0xe1   : >> { %1568 = vst.msk [vmem:[%s2307_s29 + $0x40] sm:$0xff] %vm335_vm0, %v535_v56 }
  0xe2   : >> { %1552 = vst.msk [vmem:[%s2295_s28 + $0x50] sm:$0xff] %vm335_vm0, %v484_v44 }
  0xe3   : >> { %1561 = vst.msk [vmem:[%s2302_s22 + $0x50] sm:$0xff] %vm335_vm0, %v511_v58 }
  0xe4   : >> { %1570 = vst.msk [vmem:[%s2307_s29 + $0x50] sm:$0xff] %vm335_vm0, %v537_v59 }
  0xe5 LB: >> { %v1823_v60 = vld [vmem:[%s2635_s3 + $0x18] sm:$0xff]  ;;  %v1821_v61 = vld [vmem:[%s2635_s3 + $0x8] sm:$0xff]  ;;  %v1822_v0 = vld [vmem:[%s2635_s3 + $0x10] sm:$0xff]  ;;  %s2384_s16 = sshll.u32 %s2003_s27, 6  ;;  %s552_s27 = sadd.s32 1, %s2003_s27   ;;  %s2003_s27 = sphi %s2366_s27, %s552_s27  }
  0xe6   : >> { %1863 = vmatpush.bf16.msra.mxu2 %v1823_v60  ;;  %1865 = vmatpush.bf16.msra.mxu3 %v1821_v61  ;;  %v1820_v2 = vld [vmem:[%s2635_s3] sm:$0xff]  ;;  %v1825_v3 = vld [vmem:[%s2635_s3 + $0x28] sm:$0xff]  ;;  %v1827_v4 = vld [vmem:[%s2635_s3 + $0x38] sm:$0xff]  ;;  %s2393_s26 = scalar_lea.vmem [#allocation2], %s2384_s16  ;;  %s2398_s28 = scalar_lea.vmem [#allocation3], %s2384_s16 }
  0xe7   : >> { %621 = vmatpush.bf16.msra.mxu0 %v1823_v60  ;;  %674 = vmatpush.bf16.msra.mxu1 %v1821_v61  ;;  %v1829_v21 = vld [vmem:[%s2635_s3 + $0x48] sm:$0xff]  ;;  %v1824_v62 = vld [vmem:[%s2635_s3 + $0x20] sm:$0xff]  ;;  %v1826_v63 = vld [vmem:[%s2635_s3 + $0x30] sm:$0xff]  ;;  %s2456_s0 = scalar_lea.vmem [#allocation4], %s2384_s16  ;;  %p549_p12 = scmp.ge.s32.totalorder %s552_s27, 4  }
  0xe8   : >> { %v1833_v1 = vld [vmem:[%s2635_s3 + $0x68] sm:$0xff]  ;;  %v1835_v24 = vld [vmem:[%s2635_s3 + $0x78] sm:$0xff]  ;;  %v1828_v26 = vld [vmem:[%s2635_s3 + $0x40] sm:$0xff]  ;;  %s2650_s24 = scalar_lea.vmem (%p549_p12), [#allocation5], %s2115_s25  ;;  %s2651_s14 = sand.u32 (%p549_p12), 1, %s1987_s10  }
  0xe9   : >> { %v1586_v5 = vld [vmem:[%s2393_s26 + $0x28] sm:$0xff]  ;;  %v1587_v6 = vld [vmem:[%s2393_s26 + $0x30] sm:$0xff]  ;;  %v1831_v25 = vld [vmem:[%s2635_s3 + $0x58] sm:$0xff]  ;;  %s1383_s22 = sshll.u32 (%p549_p12), %s2650_s24, 4  ;;  %s1384_s22 = int_to_ptr.vmem [resolvable:$true] %s1383_s22 }
  0xea   : >> { %v1577_v7 = vld [vmem:[%s2398_s28 + $0x27] sm:$0xff]  ;;  %v2401_v8 = vpack.c.bf16 %v1587_v6, %v1586_v5  ;;  %v1578_v9 = vld [vmem:[%s2398_s28 + $0x2f] sm:$0xff]  ;;  %1864 = vmatpush.bf16.msra.mxu2 %v1822_v0  ;;  %1866 = vmatpush.bf16.msra.mxu3 %v1820_v2  ;;  %v1588_v29 = vld [vmem:[%s2393_s26 + $0x38] sm:$0xff] }
  0xeb   : >> { %v1582_v10 = vld [vmem:[%s2393_s26 + $0x8] sm:$0xff]  ;;  %v1583_v11 = vld [vmem:[%s2393_s26 + $0x10] sm:$0xff]  ;;  %v2406_v12 = vpack.c.bf16 %v1578_v9, %v1577_v7  ;;  %622 = vmatpush.bf16.msra.mxu0 %v1822_v0  ;;  %675 = vmatpush.bf16.msra.mxu1 %v1820_v2  ;;  %v1589_v30 = vld [vmem:[%s2393_s26 + $0x40] sm:$0xff] }
  0xec   : >> { %v582_v13 = vpack.c.bf16 %v1583_v11, %v1582_v10  ;;  %v1573_v14 = vld [vmem:[%s2398_s28 + $0x7] sm:$0xff]  ;;  %v1574_v15 = vld [vmem:[%s2398_s28 + $0xf] sm:$0xff]  ;;  %v1579_v31 = vld [vmem:[%s2398_s28 + $0x37] sm:$0xff]  ;;  %v585_v37 = vpack.c.bf16 %v1589_v30, %v1588_v29  ;;  %v1800_v29 = vor.u32 %v2225_v20, %v2220_v19 }
  0xed   : >> { %v564_v16 = vpack.c.bf16 %v1574_v15, %v1573_v14  ;;  %1604 = vmatmul.msk.bf16.vlgmr.msra.gmra.mxu2 %vm335_vm0, %v2401_v8  ;;  %1616 = vmatmul.msk.bf16.vlgmr.msra.gmra.mxu3 %vm335_vm0, %v2406_v12  ;;  %v1837_v27 = vld [vmem:[%s2635_s3 + $0x88] sm:$0xff]  ;;  %v1830_v28 = vld [vmem:[%s2635_s3 + $0x50] sm:$0xff]  ;;  %v1580_v32 = vld [vmem:[%s2398_s28 + $0x3f] sm:$0xff] }
  0xee   : >> { %746 = vmatpush.bf16.msrb.mxu2 %v1825_v3  ;;  %826 = vmatpush.bf16.msrb.mxu3 %v1827_v4  ;;  %v1584_v33 = vld [vmem:[%s2393_s26 + $0x18] sm:$0xff]  ;;  %v1585_v34 = vld [vmem:[%s2393_s26 + $0x20] sm:$0xff]  ;;  %v567_v38 = vpack.c.bf16 %v1580_v32, %v1579_v31  ;;  %v1619_v41 = vld [vmem:[%s2456_s0 + $0x9] sm:$0xff] }
  0xef   : >> { %1602 = vmatmul.msk.bf16.vlgmr.msra.gmra.mxu0 %vm335_vm0, %v582_v13  ;;  %1614 = vmatmul.msk.bf16.vlgmr.msra.gmra.mxu1 %vm335_vm0, %v564_v16  ;;  %v1575_v35 = vld [vmem:[%s2398_s28 + $0x17] sm:$0xff]  ;;  %v1576_v36 = vld [vmem:[%s2398_s28 + $0x1f] sm:$0xff]  ;;  %v583_v39 = vpack.c.bf16 %v1585_v34, %v1584_v33  ;;  %v1696_v51 = vld [vmem:[%s2456_s0 + $0x29] sm:$0xff] }
  0xf0   : >> { %906 = vmatpush.bf16.msrb.mxu0 %v1829_v21  ;;  %986 = vmatpush.bf16.msrb.mxu1 %v1831_v25  ;;  %v565_v40 = vpack.c.bf16 %v1576_v36, %v1575_v35  ;;  %v1620_v42 = vld [vmem:[%s2456_s0 + $0x11] sm:$0xff]  ;;  %v1694_v43 = vld [vmem:[%s2456_s0 + $0x19] sm:$0xff]  ;;  %v1695_v45 = vld [vmem:[%s2456_s0 + $0x21] sm:$0xff] }
  0xf1   : >> { %v707_v46 = vpack.c.bf16 %v1620_v42, %v1619_v41  ;;  %v947_v47 = vpack.c.bf16 %v1695_v45, %v1694_v43  ;;  %v1832_v48 = vld [vmem:[%s2635_s3 + $0x60] sm:$0xff]  ;;  %v1834_v49 = vld [vmem:[%s2635_s3 + $0x70] sm:$0xff]  ;;  %v1675_v58 = vld [vmem:[%s2393_s26 + $0x48] sm:$0xff] }
  0xf2   : >> { %747 = vmatpush.bf16.msrb.mxu2 %v1824_v62  ;;  %827 = vmatpush.bf16.msrb.mxu3 %v1826_v63  ;;  %v1836_v50 = vld [vmem:[%s2635_s3 + $0x80] sm:$0xff]  ;;  %v1697_v52 = vld [vmem:[%s2456_s0 + $0x31] sm:$0xff]  ;;  %v1700_v60 = vld [vmem:[%s2456_s0 + $0x49] sm:$0xff] }
  0xf3   : >> { %v948_v53 = vpack.c.bf16 %v1697_v52, %v1696_v51  ;;  %v1698_v44 = vld [vmem:[%s2456_s0 + $0x39] sm:$0xff]  ;;  %v1699_v54 = vld [vmem:[%s2456_s0 + $0x41] sm:$0xff]  ;;  %v1651_v57 = vld [vmem:[%s2398_s28 + $0x4f] sm:$0xff] }
  0xf4   : >> { %907 = vmatpush.bf16.msrb.mxu0 %v1828_v26  ;;  %987 = vmatpush.bf16.msrb.mxu1 %v1830_v28  ;;  %v949_v55 = vpack.c.bf16 %v1699_v54, %v1698_v44  ;;  %v1650_v56 = vld [vmem:[%s2398_s28 + $0x47] sm:$0xff]  ;;  %v1676_v59 = vld [vmem:[%s2393_s26 + $0x50] sm:$0xff]  ;;  %v1726_v10 = vld [vmem:[%s2398_s28 + $0x5f] sm:$0xff]  ;;  %v1796_v44 = vor.u32 %v2214_v18, %v2209_v17 }
  0xf5   : >> { %v1701_v61 = vld [vmem:[%s2456_s0 + $0x51] sm:$0xff]  ;;  %v790_v0 = vpack.c.bf16 %v1651_v57, %v1650_v56  ;;  %v870_v2 = vpack.c.bf16 %v1676_v59, %v1675_v58  ;;  %v1775_v13 = vld [vmem:[%s2456_s0 + $0x59] sm:$0xff]  ;;  %v1776_v14 = vld [vmem:[%s2456_s0 + $0x61] sm:$0xff] }
  0xf6   : >> { %1066 = vmatpush.bf16.msra.mxu2 %v1833_v1  ;;  %1146 = vmatpush.bf16.msra.mxu3 %v1835_v24  ;;  %v950_v3 = vpack.c.bf16 %v1701_v61, %v1700_v60  ;;  %v1725_v9 = vld [vmem:[%s2398_s28 + $0x57] sm:$0xff]  ;;  %v1190_v1 = vpack.c.bf16 %v1776_v14, %v1775_v13  ;;  %s2649_s28 = scalar_lea.vmem [#allocation5], %s2115_s25 }
  0xf7   : >> { %v1750_v11 = vld [vmem:[%s2393_s26 + $0x58] sm:$0xff]  ;;  %v1030_v62 = vpack.c.bf16 %v1726_v10, %v1725_v9  ;;  %s2577_s17 = scalar_lea.vmem %s2649_s28, %s2384_s16 [#allocation5] }
  0xf8   : >> { %1226 = vmatpush.bf16.msra.mxu0 %v1837_v27  ;;  %1313 = vmatpush.bf16.msra.mxu1 %v1800_v29 }
  0xfa   : >> { %1067 = vmatpush.bf16.msra.mxu2 %v1832_v48  ;;  %1147 = vmatpush.bf16.msra.mxu3 %v1834_v49 }
  0xfc   : >> { %1227 = vmatpush.bf16.msra.mxu0 %v1836_v50  ;;  %1314 = vmatpush.bf16.msra.mxu1 %v1796_v44 }
  0xfd   : >> { %1605 = vmatmul.msk.bf16.gmra.mxu2 %vm335_vm0, %v585_v37  ;;  %1617 = vmatmul.msk.bf16.gmra.mxu3 %vm335_vm0, %v567_v38 }
  0xff   : >> { %1603 = vmatmul.msk.bf16.gmra.mxu0 %vm335_vm0, %v583_v39  ;;  %1615 = vmatmul.msk.bf16.gmra.mxu1 %vm335_vm0, %v565_v40 }
 0x10d   : >> { %1639 = vmatmul.msk.bf16.vlgmr.msrb.gmra.mxu2 %vm335_vm0, %v707_v46  ;;  %1664 = vmatmul.msk.bf16.vlgmr.msrb.gmra.mxu3 %vm335_vm0, %v565_v40 }
 0x10f   : >> { %1689 = vmatmul.msk.bf16.vlgmr.msrb.gmra.mxu0 %vm335_vm0, %v583_v39  ;;  %1714 = vmatmul.msk.bf16.vlgmr.msrb.gmra.mxu1 %vm335_vm0, %v947_v47 }
 0x11d   : >> { %1640 = vmatmul.msk.bf16.gmra.mxu2 %vm335_vm0, %v947_v47  ;;  %1665 = vmatmul.msk.bf16.gmra.mxu3 %vm335_vm0, %v2406_v12 }
 0x11f   : >> { %1690 = vmatmul.msk.bf16.gmra.mxu0 %vm335_vm0, %v2401_v8  ;;  %1715 = vmatmul.msk.bf16.gmra.mxu1 %vm335_vm0, %v948_v53 }
 0x12d   : >> { %1641 = vmatmul.msk.bf16.gmra.mxu2 %vm335_vm0, %v948_v53  ;;  %1666 = vmatmul.msk.bf16.gmra.mxu3 %vm335_vm0, %v567_v38 }
 0x12f   : >> { %1691 = vmatmul.msk.bf16.gmra.mxu0 %vm335_vm0, %v585_v37  ;;  %1716 = vmatmul.msk.bf16.gmra.mxu1 %vm335_vm0, %v949_v55 }
 0x13d   : >> { %1642 = vmatmul.msk.bf16.gmra.mxu2 %vm335_vm0, %v949_v55  ;;  %1667 = vmatmul.msk.bf16.gmra.mxu3 %vm335_vm0, %v790_v0 }
 0x13f   : >> { %1692 = vmatmul.msk.bf16.gmra.mxu0 %vm335_vm0, %v870_v2  ;;  %1717 = vmatmul.msk.bf16.gmra.mxu1 %vm335_vm0, %v950_v3 }
 0x14d   : >> { %1739 = vmatmul.msk.bf16.vlgmr.msra.gmra.mxu2 %vm335_vm0, %v2406_v12  ;;  %1764 = vmatmul.msk.bf16.vlgmr.msra.gmra.mxu3 %vm335_vm0, %v2401_v8  ;;  %v1751_v12 = vld [vmem:[%s2393_s26 + $0x60] sm:$0xff]  ;;  %s2571_s26 = scalar_lea.vmem %s2170_s21, %s2384_s16  ;;  %s1838_s16 = sshll.u32 (%p549_p12), %s2079_s13, 8 }
 0x14e   : >> { %v1110_v63 = vpack.c.bf16 %v1751_v12, %v1750_v11  ;;  %s1382_s23 = scalar_lea.hbm (%p549_p12), %s2641_s9, %s1838_s16 }
 0x14f   : >> { %1789 = vmatmul.msk.bf16.vlgmr.msra.gmra.mxu0 %vm335_vm0, %v948_v53  ;;  %s1385_s29 = sshll.u32 (%p549_p12), %s1382_s23, 4  ;;  %s1386_s29 = int_to_ptr.hbm [resolvable:$true] %s1385_s29 }
 0x150   : > { %s1939_s28 = sshra.s32 (%p549_p12), %s1386_s29, 4  ;;  %s1940_s28 = int_to_ptr.hbm [resolvable:$true] %s1939_s28 }
 0x151   : > { %s1941_s27 = scalar_lea.hbm (%p549_p12), %s1940_s28, 256  ;;  %p1946_p2 = scmp.lt.s32.totalorder (%p549_p12), %s1940_s28, %s2641_s9 }
 0x152   : > { %p1942_p13 = scmp.ne.s32.totalorder (%p549_p12), %s1940_s28, %s1941_s27 }
 0x154   : > { %p1943_p0 = pnand (%p549_p12), %p1942_p13, %p2096_p5 }
 0x156   : > { %p1944_p1 = pneg (%p549_p12), %p1943_p0 }
 0x15d   : >> { %1740 = vmatmul.msk.bf16.gmra.mxu2 %vm335_vm0, %v567_v38  ;;  %1765 = vmatmul.msk.bf16.gmra.mxu3 %vm335_vm0, %v585_v37 }
 0x15f   : >> { %1790 = vmatmul.msk.bf16.gmra.mxu0 %vm335_vm0, %v949_v55 }
 0x16c   : >> { %v624_v4 = vpop.f32.mrf.mxu0  ;;  %v677_v33 = vpop.f32.mrf.mxu1 }
 0x16d   : >> { %1741 = vmatmul.msk.bf16.gmra.mxu2 %vm335_vm0, %v790_v0  ;;  %1766 = vmatmul.msk.bf16.gmra.mxu3 %vm335_vm0, %v870_v2  ;;  %v678_v35 = vadd.f32 %v677_v33, %v624_v4 }
 0x16f   : >> { %1791 = vmatmul.msk.bf16.gmra.mxu0 %vm335_vm0, %v950_v3 }
 0x170   : >> { %v634_v5 = vpop.f32.mrf.mxu2  ;;  %v687_v6 = vpop.f32.mrf.mxu3 }
 0x171   : >> { %v688_v7 = vadd.f32 %v687_v6, %v634_v5 }
 0x174   : >> { %v2510_v8 = vpop.f32.mrf.mxu0  ;;  %v679_v41 = vpop.f32.mrf.mxu1 }
 0x178   : >> { %v636_v15 = vpop.f32.mrf.mxu2  ;;  %v689_v16 = vpop.f32.mrf.mxu3 }
 0x179   : >> { %v2518_v21 = vadd.f32 %v689_v16, %v636_v15 }
 0x17c   : >> { %v629_v24 = vpop.f32.mrf.mxu0  ;;  %v682_v47 = vpop.f32.mrf.mxu1 }
 0x17d   : >> { %1742 = vmatmul.msk.bf16.gmra.mxu2 %vm335_vm0, %v1030_v62  ;;  %1767 = vmatmul.msk.bf16.gmra.mxu3 %vm335_vm0, %v1110_v63  ;;  %v683_v48 = vadd.f32 %v682_v47, %v629_v24  ;;  %v680_v63 = vadd.f32 %v679_v41, %v2510_v8  ;;  %v2546_v47 = vperm.slane %v2236_v22, 0 }
 0x17f   : >> { %1792 = vmatmul.msk.bf16.gmra.mxu0 %vm335_vm0, %v1190_v1 }
 0x180   : >> { %v639_v25 = vpop.f32.mrf.mxu2  ;;  %v692_v26 = vpop.f32.mrf.mxu3 }
 0x181   : >> { %v693_v27 = vadd.f32 %v692_v26, %v639_v25 }
 0x184   : >> { %v2523_v28 = vpop.f32.mrf.mxu0  ;;  %v684_v2 = vpop.f32.mrf.mxu1 }
 0x188   : >> { %v641_v30 = vpop.f32.mrf.mxu2  ;;  %v694_v31 = vpop.f32.mrf.mxu3 }
 0x189   : >> { %v2527_v32 = vadd.f32 %v694_v31, %v641_v30 }
 0x18c   : >> { %v909_v34 = vpop.f32.mrf.mxu0  ;;  %v989_v9 = vpop.f32.mrf.mxu1 }
 0x190   : >> { %v749_v36 = vpop.f32.mrf.mxu2  ;;  %v829_v37 = vpop.f32.mrf.mxu3 }
 0x191   : >> { %v769_v38 = vadd.f32 %v749_v36, %v678_v35 }
 0x193   : >> { %v849_v39 = vadd.f32 %v829_v37, %v769_v38 }
 0x194   : >> { %v911_v40 = vpop.f32.mrf.mxu0  ;;  %v991_v16 = vpop.f32.mrf.mxu1 }
 0x195   : >> { %v929_v42 = vadd.f32 %v909_v34, %v849_v39  ;;  %v685_v39 = vadd.f32 %v684_v2, %v2523_v28 }
 0x197   : >> { %v1009_v25 = vadd.f32 %v989_v9, %v929_v42 }
 0x198   : >> { %v751_v43 = vpop.f32.mrf.mxu2  ;;  %v831_v45 = vpop.f32.mrf.mxu3 }
 0x199   : >> { %v770_v1 = vadd.f32 %v751_v43, %v680_v63 }
 0x19b   : >> { %v850_v26 = vadd.f32 %v831_v45, %v770_v1 }
 0x19c   : >> { %v914_v46 = vpop.f32.mrf.mxu0  ;;  %v994_v31 = vpop.f32.mrf.mxu1 }
 0x19d   : >> { %v930_v33 = vadd.f32 %v911_v40, %v850_v26 }
 0x19f   : >> { %v1010_v36 = vadd.f32 %v991_v16, %v930_v33 }
 0x1a0   : >> { %v754_v49 = vpop.f32.mrf.mxu2  ;;  %v834_v50 = vpop.f32.mrf.mxu3 }
 0x1a1   : >> { %v771_v51 = vadd.f32 %v754_v49, %v683_v48 }
 0x1a3   : >> { %v851_v52 = vadd.f32 %v834_v50, %v771_v51 }
 0x1a4   : >> { %v916_v53 = vpop.f32.mrf.mxu0  ;;  %v996_v42 = vpop.f32.mrf.mxu1 }
 0x1a5   : >> { %v931_v54 = vadd.f32 %v914_v46, %v851_v52 }
 0x1a7   : >> { %v1011_v40 = vadd.f32 %v994_v31, %v931_v54 }
 0x1a8   : >> { %v756_v55 = vpop.f32.mrf.mxu2  ;;  %v836_v56 = vpop.f32.mrf.mxu3 }
 0x1a9   : >> { %v772_v41 = vadd.f32 %v756_v55, %v685_v39 }
 0x1ab   : >> { %v852_v50 = vadd.f32 %v836_v56, %v772_v41 }
 0x1ac   : >> { %v919_v57 = vpop.f32.mrf.mxu0  ;;  %v999_v2 = vpop.f32.mrf.mxu1 }
 0x1b0   : >> { %v759_v58 = vpop.f32.mrf.mxu2  ;;  %v839_v59 = vpop.f32.mrf.mxu3 }
 0x1b1   : >> { %v773_v60 = vadd.f32 %v759_v58, %v688_v7 }
 0x1b3   : >> { %v853_v61 = vadd.f32 %v839_v59, %v773_v60  ;;  %v932_v59 = vadd.f32 %v916_v53, %v852_v50 }
 0x1b4   : >> { %v2531_v0 = vpop.f32.mrf.mxu0 }
 0x1b5   : >> { %v2533_v3 = vadd.f32 %v919_v57, %v853_v61 }
 0x1b7   : >> { %v1013_v53 = vadd.f32 %v999_v2, %v2533_v3 }
 0x1b8   : >> { %v761_v4 = vpop.f32.mrf.mxu2  ;;  %v841_v5 = vpop.f32.mrf.mxu3 }
 0x1b9   : >> { %v774_v56 = vadd.f32 %v761_v4, %v2518_v21 }
 0x1bb   : >> { %v854_v1 = vadd.f32 %v841_v5, %v774_v56 }
 0x1bc   : >> { %v924_v6 = vpop.f32.mrf.mxu0 }
 0x1bd   : >> { %v934_v33 = vadd.f32 %v2531_v0, %v854_v1 }
 0x1c0   : >> { %v764_v10 = vpop.f32.mrf.mxu2  ;;  %v844_v11 = vpop.f32.mrf.mxu3 }
 0x1c1   : >> { %v775_v12 = vadd.f32 %v764_v10, %v693_v27 }
 0x1c3   : >> { %v855_v13 = vadd.f32 %v844_v11, %v775_v12 }
 0x1c4   : >> { %v2535_v14 = vpop.f32.mrf.mxu0 }
 0x1c5   : >> { %v2537_v15 = vadd.f32 %v924_v6, %v855_v13  ;;  %v1012_v6 = vadd.f32 %v996_v42, %v932_v59 }
 0x1c8   : >> { %v2539_v7 = vpop.f32.mrf.mxu2  ;;  %v2541_v62 = vpop.f32.mrf.mxu3 }
 0x1c9   : >> { %v776_v39 = vadd.f32 %v2539_v7, %v2527_v32 }
 0x1cb   : >> { %v856_v42 = vadd.f32 %v2541_v62, %v776_v39 }
 0x1cc   : >> { %v1229_v24 = vpop.f32.mrf.mxu0 }
 0x1d0   : >> { %v1069_v29 = vpop.f32.mrf.mxu2  ;;  %v1149_v30 = vpop.f32.mrf.mxu3 }
 0x1d1   : >> { %v1089_v27 = vadd.f32 %v1069_v29, %v1009_v25 }
 0x1d3   : >> { %v1169_v35 = vadd.f32 %v1149_v30, %v1089_v27 }
 0x1d4   : >> { %v1231_v34 = vpop.f32.mrf.mxu0 }
 0x1d5   : >> { %v1249_v46 = vadd.f32 %v1229_v24, %v1169_v35  ;;  %v1001_v24 = vpop.f32.mrf.mxu1 }
 0x1d6   : >> { %v1014_v4 = vadd.f32 %v1001_v24, %v934_v33 }
 0x1d7   : >> { %v1260_v48 = vadd.f32 %v2546_v47, %v1249_v46 }
 0x1d8   : >> { %v1071_v37 = vpop.f32.mrf.mxu2  ;;  %v1151_v38 = vpop.f32.mrf.mxu3 }
 0x1d9   : >> { %v1090_v8 = vadd.f32 %v1071_v37, %v1010_v36  ;;  %v1268_v57 = vmax.f32 %v1260_v48, 0.0 }
 0x1db   : >> { %v1170_v43 = vadd.f32 %v1151_v38, %v1090_v8 }
 0x1dc   : >> { %v1234_v45 = vpop.f32.mrf.mxu0 }
 0x1dd   : >> { %v1250_v49 = vadd.f32 %v1231_v34, %v1170_v43  ;;  %v1004_v38 = vpop.f32.mrf.mxu1 }
 0x1de   : >> { %v1015_v0 = vadd.f32 %v1004_v38, %v2537_v15  ;;  %v1342_v38 = vld [vmem:[%s2571_s26 + $0x28] sm:$0xff] }
 0x1df   : >> { %v1261_v51 = vadd.f32 %v2546_v47, %v1250_v49 }
 0x1e0   : >> { %v1074_v52 = vpop.f32.mrf.mxu2  ;;  %v1154_v44 = vpop.f32.mrf.mxu3 }
 0x1e1   : >> { %v1269_v28 = vmax.f32 %v1261_v51, 0.0  ;;  %v1091_v58 = vadd.f32 %v1074_v52, %v1011_v40  ;;  %v936_v52 = vadd.f32 %v2535_v14, %v856_v42 }
 0x1e3   : >> { %v1276_v60 = vpack.c.bf16 %v1269_v28, %v1268_v57  ;;  %v1171_v55 = vadd.f32 %v1154_v44, %v1091_v58 }
 0x1e4   : >> { %v1236_v61 = vpop.f32.mrf.mxu0 }
 0x1e5   : >> { %1801 = vmatmul.msk.bf16.vlgmr.msra.gmra.mxu1 %vm335_vm0, %v1276_v60  ;;  %v1251_v11 = vadd.f32 %v1234_v45, %v1171_v55  ;;  %v1006_v32 = vpop.f32.mrf.mxu1 }
 0x1e6   : >> { %v1016_v15 = vadd.f32 %v1006_v32, %v936_v52 }
 0x1e7   : >> { %v1262_v63 = vadd.f32 %v2546_v47, %v1251_v11 }
 0x1e8   : >> { %v1076_v9 = vpop.f32.mrf.mxu2  ;;  %v1156_v10 = vpop.f32.mrf.mxu3 }
 0x1e9   : >> { %v1092_v54 = vadd.f32 %v1076_v9, %v1012_v6  ;;  %v1270_v31 = vmax.f32 %v1262_v63, 0.0 }
 0x1eb   : >> { %v1172_v12 = vadd.f32 %v1156_v10, %v1092_v54  ;;  %v1281_v10 = vperm.slane %v2242_v23, 0  ;;  %v1337_v54 = vld [vmem:[%s2571_s26] sm:$0xff] }
 0x1ec   : >> { %v1239_v16 = vpop.f32.mrf.mxu0 }
 0x1ed   : >> { %v1252_v13 = vadd.f32 %v1236_v61, %v1172_v12 }
 0x1ef   : >> { %v1263_v25 = vadd.f32 %v2546_v47, %v1252_v13 }
 0x1f0   : >> { %v1079_v26 = vpop.f32.mrf.mxu2  ;;  %v1159_v29 = vpop.f32.mrf.mxu3 }
 0x1f1   : >> { %v1093_v30 = vadd.f32 %v1079_v26, %v1013_v53  ;;  %v1271_v27 = vmax.f32 %v1263_v25, 0.0  ;;  %v1339_v25 = vld [vmem:[%s2571_s26 + $0x10] sm:$0xff] }
 0x1f3   : >> { %v1277_v34 = vpack.c.bf16 %v1271_v27, %v1270_v31  ;;  %v1173_v21 = vadd.f32 %v1159_v29, %v1093_v30  ;;  %v1340_v27 = vld [vmem:[%s2571_s26 + $0x18] sm:$0xff] }
 0x1f4   : >> { %v1241_v35 = vpop.f32.mrf.mxu0 }
 0x1f5   : >> { %1802 = vmatmul.msk.bf16.gmra.mxu1 %vm335_vm0, %v1277_v34  ;;  %v1253_v3 = vadd.f32 %v1239_v16, %v1173_v21  ;;  %v1338_v16 = vld [vmem:[%s2571_s26 + $0x8] sm:$0xff] }
 0x1f7   : >> { %v1264_v41 = vadd.f32 %v2546_v47, %v1253_v3 }
 0x1f8   : >> { %v1081_v36 = vpop.f32.mrf.mxu2  ;;  %v1161_v37 = vpop.f32.mrf.mxu3 }
 0x1f9   : >> { %v1094_v5 = vadd.f32 %v1081_v36, %v1014_v4  ;;  %v1272_v40 = vmax.f32 %v1264_v41, 0.0 }
 0x1fb   : >> { %v1174_v46 = vadd.f32 %v1161_v37, %v1094_v5 }
 0x1fc   : >> { %v1244_v51 = vpop.f32.mrf.mxu0 }
 0x1fd   : >> { %v1254_v8 = vadd.f32 %v1241_v35, %v1174_v46  ;;  %v1341_v35 = vld [vmem:[%s2571_s26 + $0x20] sm:$0xff] }
 0x1ff   : >> { %v1265_v43 = vadd.f32 %v2546_v47, %v1254_v8 }
 0x200   : >> { %v1084_v45 = vpop.f32.mrf.mxu2  ;;  %v1164_v48 = vpop.f32.mrf.mxu3 }
 0x201   : >> { %v1095_v49 = vadd.f32 %v1084_v45, %v1015_v0  ;;  %v1273_v50 = vmax.f32 %v1265_v43, 0.0  ;;  %v1343_v0 = vld [vmem:[%s2571_s26 + $0x30] sm:$0xff] }
 0x203   : >> { %v1278_v44 = vpack.c.bf16 %v1273_v50, %v1272_v40  ;;  %v1175_v7 = vadd.f32 %v1164_v48, %v1095_v49  ;;  %v1344_v49 = vld [vmem:[%s2571_s26 + $0x38] sm:$0xff]  ;;  %s1371_s26 = scalar_lea.sflag (%p549_p12), [#allocation6], %s2651_s14 }
 0x204   : >> { %v1246_v60 = vpop.f32.mrf.mxu0 }
 0x205   : >> { %1803 = vmatmul.msk.bf16.gmra.mxu1 %vm335_vm0, %v1278_v44  ;;  %v1255_v62 = vadd.f32 %v1244_v51, %v1175_v7 }
 0x207   : >> { %v1266_v2 = vadd.f32 %v2546_v47, %v1255_v62 }
 0x208   : >> { %v1086_v57 = vpop.f32.mrf.mxu2  ;;  %v1166_v58 = vpop.f32.mrf.mxu3 }
 0x209   : >> { %v1096_v28 = vadd.f32 %v1086_v57, %v1016_v15  ;;  %v1274_v55 = vmax.f32 %v1266_v2, 0.0 }
 0x20b   : >> { %v1176_v59 = vadd.f32 %v1166_v58, %v1096_v28 }
 0x20d   : >> { %v1256_v61 = vadd.f32 %v1246_v60, %v1176_v59 }
 0x20f   : >> { %v1267_v14 = vadd.f32 %v2546_v47, %v1256_v61 }
 0x211   : >> { %v1275_v6 = vmax.f32 %v1267_v14, 0.0 }
 0x213   : >> { %v1279_v9 = vpack.c.bf16 %v1275_v6, %v1274_v55 }
 0x215   : >> { %1804 = vmatmul.msk.bf16.gmra.mxu1 %vm335_vm0, %v1279_v9 }
 0x262   : >> { %v1316_v11 = vpop.f32.mrf.mxu1 }
 0x263   : >> { %v1317_v56 = vadd.f32 %v1316_v11, %v1281_v10 }
 0x265   : >> { %v1345_v12 = vadd.f32 %v1337_v54, %v1317_v56 }
 0x267   : >> { %v1353_v47 = vmax.f32 %v1345_v12, 0.0 }
 0x269   : >> { %1362 = vst [vmem:[%s2577_s17] sm:$0xff] %v1353_v47 }
 0x26a   : >> { %v1318_v13 = vpop.f32.mrf.mxu1 }
 0x26b   : >> { %v1319_v63 = vadd.f32 %v1318_v13, %v1281_v10 }
 0x26d   : >> { %v1346_v53 = vadd.f32 %v1338_v16, %v1319_v63 }
 0x26f   : >> { %v1354_v1 = vmax.f32 %v1346_v53, 0.0 }
 0x271   : >> { %1363 = vst [vmem:[%s2577_s17 + $0x8] sm:$0xff] %v1354_v1 }
 0x272   : >> { %v1321_v24 = vpop.f32.mrf.mxu1 }
 0x273   : >> { %v1322_v26 = vadd.f32 %v1321_v24, %v1281_v10 }
 0x275   : >> { %v1347_v29 = vadd.f32 %v1339_v25, %v1322_v26 }
 0x277   : >> { %v1355_v30 = vmax.f32 %v1347_v29, 0.0 }
 0x279   : >> { %1364 = vst [vmem:[%s2577_s17 + $0x10] sm:$0xff] %v1355_v30 }
 0x27a   : >> { %v1323_v31 = vpop.f32.mrf.mxu1 }
 0x27b   : >> { %v1324_v33 = vadd.f32 %v1323_v31, %v1281_v10 }
 0x27d   : >> { %v1348_v34 = vadd.f32 %v1340_v27, %v1324_v33 }
 0x27f   : >> { %v1356_v21 = vmax.f32 %v1348_v34, 0.0 }
 0x281   : >> { %1365 = vst [vmem:[%s2577_s17 + $0x18] sm:$0xff] %v1356_v21 }
 0x282   : >> { %v1326_v4 = vpop.f32.mrf.mxu1 }
 0x283   : >> { %v1327_v36 = vadd.f32 %v1326_v4, %v1281_v10 }
 0x285   : >> { %v1349_v37 = vadd.f32 %v1341_v35, %v1327_v36 }
 0x287   : >> { %v1357_v3 = vmax.f32 %v1349_v37, 0.0 }
 0x289   : >> { %1366 = vst [vmem:[%s2577_s17 + $0x20] sm:$0xff] %v1357_v3 }
 0x28a   : >> { %v1328_v5 = vpop.f32.mrf.mxu1 }
 0x28b   : >> { %v1329_v39 = vadd.f32 %v1328_v5, %v1281_v10 }
 0x28d   : >> { %v1350_v46 = vadd.f32 %v1342_v38, %v1329_v39 }
 0x28f   : >> { %v1358_v8 = vmax.f32 %v1350_v46, 0.0 }
 0x291   : >> { %1367 = vst [vmem:[%s2577_s17 + $0x28] sm:$0xff] %v1358_v8 }
 0x292   : >> { %v1331_v41 = vpop.f32.mrf.mxu1 }
 0x293   : >> { %v1332_v42 = vadd.f32 %v1331_v41, %v1281_v10 }
 0x295   : >> { %v1351_v43 = vadd.f32 %v1343_v0, %v1332_v42 }
 0x297   : >> { %v1359_v45 = vmax.f32 %v1351_v43, 0.0 }
 0x299   : >> { %1368 = vst [vmem:[%s2577_s17 + $0x30] sm:$0xff] %v1359_v45 }
 0x29a   : >> { %v1333_v48 = vpop.f32.mrf.mxu1 }
 0x29b   : >> { %v1334_v40 = vadd.f32 %v1333_v48, %v1281_v10 }
 0x29d   : >> { %v1352_v50 = vadd.f32 %v1344_v49, %v1334_v40  ;;  %551 = sbr.rel (!%p549_p12) target bundleno = 229 (0xe5), region = 141 }
 0x29f   : >> { %v1360_v51 = vmax.f32 %v1352_v50, 0.0 }
 0x2a1   : >> { %1369 = vst [vmem:[%s2577_s17 + $0x38] sm:$0xff] %v1360_v51  ;;  %s1945_s17 = scalar_lea.hbm (%p549_p12), %s2641_s9, 512 }
 0x2a2   : > { %p1947_p3 = scmp.lt.s32.totalorder %s1945_s17, %s1941_s27 }
 0x2a4   : > { %p1948_p4 = por %p1947_p3, %p1946_p2 }
 0x2a6   : > { %p1949_p7 = pnand %p1948_p4, %p1944_p1 }
 0x2a8   : > { %1952 = shalt.err (!%p1949_p7)
}
 0x2a9   : > { %s2006_s25 = smov 128   ;;  %s2007_s1 = smov 8  }
 0x2aa   : > { %1867 = dma.vmem_to_hbm [thread:$0]  (%p2096_p5), %s1384_s22, 4096, %s1386_s29, %s1371_s26, %s2006_s25, %s2006_s25, %s2007_s1  }
 0x2ab PF: > { %p1873_p8 = scmp.ge.s32.totalorder %s1995_s12, 2  ;;  %s1400_s23 = sand.u32 1, %s1983_s30  }
 0x2ac   : > { %s1401_s24 = scalar_lea.sflag [#allocation6], %s1400_s23 }
 0x2ad   : > { %p1870_p9 = pnand %p1873_p8, %p2100_p6 }
 0x2af   : > { %p1871_p10 = pneg %p1870_p9 }
 0x2b1   : > { %1978 = dma.done.wait (%p1871_p10), %s1401_s24, 4096  }
 0x2b2   : > { %1980 = vsyncadd (%p1871_p10), %s1401_s24, 4294963200  ;;  %p19_p11 = scmp.ge.s32.totalorder %s2083_s15, 4   ;;  %s2652_s30 = smov %s1987_s10 }
 0x2b3   : > { %s2653_s10 = smov %s1991_s11  ;;  %s2654_s11 = smov %s2094_s18 }
 0x2b4   : > { %s2655_s12 = smov %s2083_s15  ;;  %21 = sbr.rel (!%p19_p11) target bundleno = 6 (0x6), region = 152 }
 0x2b9   :  { %1407 = vsyncpa [#allocation6], 1 }
 0x2ba   :  { %1409 = vsyncpa [#allocation6 + $0x1], 1 }

</bundles_post_ra>
